<compile_context>
chip_gen: v6e
topology: v6e:2x2x1
jax: 0.10.0
libtpu: 0.0.40
codegen_flags: <defaults>
</compile_context>

<pallas_src>
import functools

import jax
import jax.numpy as jnp
from jax import lax
from jax.experimental import pallas as pl
from jax.experimental.pallas import tpu as pltpu


def _layernorm(v, g, b, eps=1e-5):
    mu = jnp.mean(v, axis=-1, keepdims=True)
    var = jnp.mean((v - mu) ** 2, axis=-1, keepdims=True)
    return (v - mu) * lax.rsqrt(var + eps) * g + b


def block_kernel(x_ref,
                 g1_ref, b1_ref,
                 wqkv_ref,
                 wp_ref, bp_ref,
                 g2_ref, b2_ref,
                 w1_ref, bb1_ref,
                 w2_ref, bb2_ref,
                 o_ref, *, num_heads):
    B, T, C = x_ref.shape
    hs = C // num_heads

    # Merge leading (batch, seq) dims: layout-safe (T == 8 == sublane count).
    x = x_ref[...].astype(jnp.float32).reshape(B * T, C)          # (B*T, C)

    # ---- ln1 + fused QKV projection ---------------------------------------
    xl = _layernorm(x, g1_ref[0], b1_ref[0])
    qkv = jnp.dot(xl, wqkv_ref[...], preferred_element_type=jnp.float32)   # (B*T, 3C)
    K = qkv[:, 0 * C:1 * C]
    Q = qkv[:, 1 * C:2 * C]
    V = qkv[:, 2 * C:3 * C]

    # Causal mask / scale: computed once for the whole kernel invocation.
    row = lax.broadcasted_iota(jnp.int32, (T, T), 0)
    col = lax.broadcasted_iota(jnp.int32, (T, T), 1)
    causal = col <= row
    neg_inf = jnp.float32(-jnp.inf)
    scale = C ** (-0.5)        # reference scales by emb_dim, not head_size

    # ---- multi-head causal self-attention (static unroll: B=2 x heads=4) ---
    batch_outs = []
    for b in range(B):
        kb = K[b * T:(b + 1) * T, :]       # sublane-aligned slices (multiples of 8)
        qb = Q[b * T:(b + 1) * T, :]
        vb = V[b * T:(b + 1) * T, :]
        head_outs = []
        for h in range(num_heads):
            kh = kb[:, h * hs:(h + 1) * hs]
            qh = qb[:, h * hs:(h + 1) * hs]
            vh = vb[:, h * hs:(h + 1) * hs]
            # Reference quirk: scores = k @ q^T.  Expressed as a dot_general
            # contraction over the last axes (no materialized transpose).
            wei = lax.dot_general(kh, qh, (((1,), (1,)), ((), ())),
                                  preferred_element_type=jnp.float32) * scale
            wei = jnp.where(causal, wei, neg_inf)
            wei = wei - jnp.max(wei, axis=-1, keepdims=True)
            p = jnp.exp(wei)
            denom = jnp.sum(p, axis=-1, keepdims=True)
            p = p * pl.reciprocal(denom, approx=True)               # EUP divide
            head_outs.append(jnp.dot(p, vh, preferred_element_type=jnp.float32))
        batch_outs.append(jnp.concatenate(head_outs, axis=-1))      # (T, C)
    sa = jnp.concatenate(batch_outs, axis=0)                        # (B*T, C)

    sa = jnp.dot(sa, wp_ref[...], preferred_element_type=jnp.float32) + bp_ref[0]
    # TODO(synk): nn.Dropout layers are identity at inference time; no kernel-side op.

    x1 = x + sa

    # ---- ln2 + feedforward --------------------------------------------------
    x2 = _layernorm(x1, g2_ref[0], b2_ref[0])
    h1 = jnp.maximum(
        jnp.dot(x2, w1_ref[...], preferred_element_type=jnp.float32) + bb1_ref[0], 0.0)
    ffo = jnp.dot(h1, w2_ref[...], preferred_element_type=jnp.float32) + bb2_ref[0]

    y = x1 + ffo
    o_ref[...] = y.reshape(B, T, C).astype(o_ref.dtype)   # split leading dim (layout-safe)


def block_scratch_forward(x, params, num_heads):
    (g1, b1, wk, wq, wv, wp, bp, g2, b2, w1, bb1, w2, bb2) = params
    B, T, C = x.shape
    H = w1.shape[1]

    # Fuse K|Q|V projections into one (C, 3C) weight -> single MXU matmul in-kernel.
    wqkv = jnp.concatenate([wk, wq, wv], axis=1)

    def full(shape):
        return pl.BlockSpec(shape, lambda i: (0,) * len(shape))

    kernel = functools.partial(block_kernel, num_heads=num_heads)
    return pl.pallas_call(
        kernel,
        out_shape=jax.ShapeDtypeStruct((B, T, C), x.dtype),
        grid_spec=pltpu.PrefetchScalarGridSpec(
            num_scalar_prefetch=0,
            grid=(1,),                       # single program: whole problem lives in VMEM
            in_specs=[
                full((B, T, C)),             # x
                full((1, C)), full((1, C)),  # ln1 gamma/beta
                full((C, 3 * C)),            # fused Wqkv
                full((C, C)), full((1, C)),  # proj W, b
                full((1, C)), full((1, C)),  # ln2 gamma/beta
                full((C, H)), full((1, H)),  # ff W1, b1
                full((H, C)), full((1, C)),  # ff W2, b2
            ],
            out_specs=full((B, T, C)),
        ),
        compiler_params=pltpu.CompilerParams(
            dimension_semantics=("arbitrary",)),
    )(x, g1, b1, wqkv, wp, bp, g2, b2, w1, bb1, w2, bb2)


def init_params(key, emb_dim):
    C = emb_dim
    H = 4 * C
    keys = jax.random.split(key, 8)
    s = 0.05
    g1 = jnp.ones((1, C), jnp.float32)
    b1 = jnp.zeros((1, C), jnp.float32)
    wk = s * jax.random.normal(keys[0], (C, C), jnp.float32)
    wq = s * jax.random.normal(keys[1], (C, C), jnp.float32)
    wv = s * jax.random.normal(keys[2], (C, C), jnp.float32)
    wp = s * jax.random.normal(keys[3], (C, C), jnp.float32)
    bp = s * jax.random.normal(keys[4], (1, C), jnp.float32)
    g2 = jnp.ones((1, C), jnp.float32)
    b2 = jnp.zeros((1, C), jnp.float32)
    w1 = s * jax.random.normal(keys[5], (C, H), jnp.float32)
    bb1 = s * jax.random.normal(keys[6], (1, H), jnp.float32)
    w2 = s * jax.random.normal(keys[7], (H, C), jnp.float32)
    bb2 = jnp.zeros((1, C), jnp.float32)
    return (g1, b1, wk, wq, wv, wp, bp, g2, b2, w1, bb1, w2, bb2)


def reference_forward(x, params, num_heads):
    """Pure-JAX reference mirroring the PyTorch module (eval mode)."""
    (g1, b1, wk, wq, wv, wp, bp, g2, b2, w1, bb1, w2, bb2) = params
    B, T, C = x.shape
    hs = C // num_heads

    def ln(v, g, b):
        mu = v.mean(-1, keepdims=True)
        var = ((v - mu) ** 2).mean(-1, keepdims=True)
        return (v - mu) / jnp.sqrt(var + 1e-5) * g + b

    xl = ln(x, g1[0], b1[0])
    K = xl @ wk
    Q = xl @ wq
    V = xl @ wv
    tril = jnp.tril(jnp.ones((T, T), bool))
    outs = []
    for h in range(num_heads):
        kh = K[..., h * hs:(h + 1) * hs]
        qh = Q[..., h * hs:(h + 1) * hs]
        vh = V[..., h * hs:(h + 1) * hs]
        wei = jnp.einsum('btd,bsd->bts', kh, qh) * (C ** -0.5)
        wei = jnp.where(tril, wei, -jnp.inf)
        wei = jax.nn.softmax(wei, axis=-1)
        outs.append(jnp.einsum('bts,bsd->btd', wei, vh))
    sa = jnp.concatenate(outs, axis=-1) @ wp + bp[0]
    x1 = x + sa
    x2 = ln(x1, g2[0], b2[0])
    ff = jnp.maximum(x2 @ w1 + bb1[0], 0.0) @ w2 + bb2[0]
    return x1 + ff


if __name__ == "__main__":
    B, T = 2, 8          # batch, block_length (= sequence length)
    emb_dim = 32
    num_heads = 4        # head_size = emb_dim // num_heads = 8

    key = jax.random.PRNGKey(0)
    kx, kp = jax.random.split(key)
    x = jax.random.normal(kx, (B, T, emb_dim), jnp.float32)
    params = init_params(kp, emb_dim)

    out = block_scratch_forward(x, params, num_heads)
    out = jax.block_until_ready(out)

    ref = reference_forward(x, params, num_heads)
    assert out.shape == (B, T, emb_dim)
    # Tolerance slightly relaxed vs. 1e-4 to accommodate the EUP approximate
    # reciprocal used for the softmax denominator (still tight enough to catch
    # any structural error).
    assert jnp.allclose(out, ref, atol=1e-3, rtol=1e-3), "mismatch vs reference"

    print("KERNEL_OK")
</pallas_src>

<mosaic_0001>
module attributes {stable_mosaic.version = 11 : i64} {
  func.func @block_kernel(%arg0: i32, %arg1: memref<2x8x32xf32, #tpu.memory_space<vmem>>, %arg2: memref<1x32xf32, #tpu.memory_space<vmem>>, %arg3: memref<1x32xf32, #tpu.memory_space<vmem>>, %arg4: memref<32x96xf32, #tpu.memory_space<vmem>>, %arg5: memref<32x32xf32, #tpu.memory_space<vmem>>, %arg6: memref<1x32xf32, #tpu.memory_space<vmem>>, %arg7: memref<1x32xf32, #tpu.memory_space<vmem>>, %arg8: memref<1x32xf32, #tpu.memory_space<vmem>>, %arg9: memref<32x128xf32, #tpu.memory_space<vmem>>, %arg10: memref<1x128xf32, #tpu.memory_space<vmem>>, %arg11: memref<128x32xf32, #tpu.memory_space<vmem>>, %arg12: memref<1x32xf32, #tpu.memory_space<vmem>>, %arg13: memref<2x8x32xf32, #tpu.memory_space<vmem>>) attributes {dimension_semantics = [#tpu.dimension_semantics<arbitrary>], iteration_bounds = array<i64: 1>, scalar_prefetch = 0 : i64, scratch_operands = 0 : i64, tpu.core_type = #tpu.core_type<tc>, window_params = [{pipeline_mode = #tpu.pipeline_mode<synchronous>, transform_indices = @transform_0, window_bounds = array<i64: 2, 8, 32>}, {pipeline_mode = #tpu.pipeline_mode<synchronous>, transform_indices = @transform_1, window_bounds = array<i64: 1, 32>}, {pipeline_mode = #tpu.pipeline_mode<synchronous>, transform_indices = @transform_2, window_bounds = array<i64: 1, 32>}, {pipeline_mode = #tpu.pipeline_mode<synchronous>, transform_indices = @transform_3, window_bounds = array<i64: 32, 96>}, {pipeline_mode = #tpu.pipeline_mode<synchronous>, transform_indices = @transform_4, window_bounds = array<i64: 32, 32>}, {pipeline_mode = #tpu.pipeline_mode<synchronous>, transform_indices = @transform_5, window_bounds = array<i64: 1, 32>}, {pipeline_mode = #tpu.pipeline_mode<synchronous>, transform_indices = @transform_6, window_bounds = array<i64: 1, 32>}, {pipeline_mode = #tpu.pipeline_mode<synchronous>, transform_indices = @transform_7, window_bounds = array<i64: 1, 32>}, {pipeline_mode = #tpu.pipeline_mode<synchronous>, transform_indices = @transform_8, window_bounds = array<i64: 32, 128>}, {pipeline_mode = #tpu.pipeline_mode<synchronous>, transform_indices = @transform_9, window_bounds = array<i64: 1, 128>}, {pipeline_mode = #tpu.pipeline_mode<synchronous>, transform_indices = @transform_10, window_bounds = array<i64: 128, 32>}, {pipeline_mode = #tpu.pipeline_mode<synchronous>, transform_indices = @transform_11, window_bounds = array<i64: 1, 32>}, {pipeline_mode = #tpu.pipeline_mode<synchronous>, transform_indices = @transform_12, window_bounds = array<i64: 2, 8, 32>}]} {
    %c0 = arith.constant 0 : index
    %c0_0 = arith.constant 0 : index
    %c0_1 = arith.constant 0 : index
    %0 = vector.load %arg1[%c0, %c0_0, %c0_1] : memref<2x8x32xf32, #tpu.memory_space<vmem>>, vector<2x8x32xf32>
    %1 = vector.shape_cast %0 : vector<2x8x32xf32> to vector<16x32xf32>
    %c0_2 = arith.constant 0 : index
    %c0_3 = arith.constant 0 : index
    %2 = vector.load %arg2[%c0_2, %c0_3] : memref<1x32xf32, #tpu.memory_space<vmem>>, vector<1x32xf32>
    %3 = vector.shape_cast %2 : vector<1x32xf32> to vector<32xf32>
    %c0_4 = arith.constant 0 : index
    %c0_5 = arith.constant 0 : index
    %4 = vector.load %arg3[%c0_4, %c0_5] : memref<1x32xf32, #tpu.memory_space<vmem>>, vector<1x32xf32>
    %5 = vector.shape_cast %4 : vector<1x32xf32> to vector<32xf32>
    %cst = arith.constant dense<0.000000e+00> : vector<16xf32>
    %6 = vector.multi_reduction <add>, %1, %cst [1] : vector<16x32xf32> to vector<16xf32>
    %7 = vector.shape_cast %6 : vector<16xf32> to vector<16x1xf32>
    %cst_6 = arith.constant 3.200000e+01 : f32
    %8 = vector.broadcast %cst_6 : f32 to vector<16x1xf32>
    %9 = arith.divf %7, %8 : vector<16x1xf32>
    %10 = vector.broadcast %9 : vector<16x1xf32> to vector<16x32xf32>
    %11 = arith.subf %1, %10 : vector<16x32xf32>
    %12 = arith.mulf %11, %11 : vector<16x32xf32>
    %cst_7 = arith.constant dense<0.000000e+00> : vector<16xf32>
    %13 = vector.multi_reduction <add>, %12, %cst_7 [1] : vector<16x32xf32> to vector<16xf32>
    %14 = vector.shape_cast %13 : vector<16xf32> to vector<16x1xf32>
    %cst_8 = arith.constant 3.200000e+01 : f32
    %15 = vector.broadcast %cst_8 : f32 to vector<16x1xf32>
    %16 = arith.divf %14, %15 : vector<16x1xf32>
    %17 = vector.broadcast %9 : vector<16x1xf32> to vector<16x32xf32>
    %18 = arith.subf %1, %17 : vector<16x32xf32>
    %cst_9 = arith.constant 9.99999974E-6 : f32
    %19 = vector.broadcast %cst_9 : f32 to vector<16x1xf32>
    %20 = arith.addf %16, %19 : vector<16x1xf32>
    %21 = math.rsqrt %20 : vector<16x1xf32>
    %22 = vector.broadcast %21 : vector<16x1xf32> to vector<16x32xf32>
    %23 = arith.mulf %18, %22 : vector<16x32xf32>
    %24 = vector.shape_cast %3 : vector<32xf32> to vector<1x32xf32>
    %25 = vector.broadcast %24 : vector<1x32xf32> to vector<16x32xf32>
    %26 = arith.mulf %23, %25 : vector<16x32xf32>
    %27 = vector.shape_cast %5 : vector<32xf32> to vector<1x32xf32>
    %28 = vector.broadcast %27 : vector<1x32xf32> to vector<16x32xf32>
    %29 = arith.addf %26, %28 : vector<16x32xf32>
    %c0_10 = arith.constant 0 : index
    %c0_11 = arith.constant 0 : index
    %30 = vector.load %arg4[%c0_10, %c0_11] : memref<32x96xf32, #tpu.memory_space<vmem>>, vector<32x96xf32>
    %cst_12 = arith.constant dense<0.000000e+00> : vector<16x96xf32>
    %31 = tpu.matmul %29, %30, %cst_12 {dimension_numbers = #tpu.dot_dimension_numbers<[1], [0], [0], [1], [0, 0, 1, 1], [], []>} : vector<16x32xf32>, vector<32x96xf32>, vector<16x96xf32> -> vector<16x96xf32>
    %32 = vector.extract_strided_slice %31 {offsets = [0, 0], sizes = [16, 32], strides = [1, 1]} : vector<16x96xf32> to vector<16x32xf32>
    %33 = vector.extract_strided_slice %31 {offsets = [0, 32], sizes = [16, 32], strides = [1, 1]} : vector<16x96xf32> to vector<16x32xf32>
    %34 = vector.extract_strided_slice %31 {offsets = [0, 64], sizes = [16, 32], strides = [1, 1]} : vector<16x96xf32> to vector<16x32xf32>
    %35 = tpu.iota {dimensions = array<i32: 0>} : vector<8x8xi32>
    %36 = tpu.iota {dimensions = array<i32: 1>} : vector<8x8xi32>
    %37 = arith.cmpi sle, %36, %35 : vector<8x8xi32>
    %38 = vector.extract_strided_slice %32 {offsets = [0, 0], sizes = [8, 32], strides = [1, 1]} : vector<16x32xf32> to vector<8x32xf32>
    %39 = vector.extract_strided_slice %33 {offsets = [0, 0], sizes = [8, 32], strides = [1, 1]} : vector<16x32xf32> to vector<8x32xf32>
    %40 = vector.extract_strided_slice %34 {offsets = [0, 0], sizes = [8, 32], strides = [1, 1]} : vector<16x32xf32> to vector<8x32xf32>
    %41 = vector.extract_strided_slice %38 {offsets = [0, 0], sizes = [8, 8], strides = [1, 1]} : vector<8x32xf32> to vector<8x8xf32>
    %42 = vector.extract_strided_slice %39 {offsets = [0, 0], sizes = [8, 8], strides = [1, 1]} : vector<8x32xf32> to vector<8x8xf32>
    %43 = vector.extract_strided_slice %40 {offsets = [0, 0], sizes = [8, 8], strides = [1, 1]} : vector<8x32xf32> to vector<8x8xf32>
    %cst_13 = arith.constant dense<0.000000e+00> : vector<8x8xf32>
    %44 = tpu.matmul %41, %42, %cst_13 {dimension_numbers = #tpu.dot_dimension_numbers<[1], [1], [0], [0], [0, 0, 1, 0], [], []>} : vector<8x8xf32>, vector<8x8xf32>, vector<8x8xf32> -> vector<8x8xf32>
    %cst_14 = arith.constant 0.176776692 : f32
    %45 = vector.broadcast %cst_14 : f32 to vector<8x8xf32>
    %46 = arith.mulf %44, %45 : vector<8x8xf32>
    %cst_15 = arith.constant 0xFF800000 : f32
    %47 = vector.broadcast %cst_15 : f32 to vector<8x8xf32>
    %48 = arith.select %37, %46, %47 : vector<8x8xi1>, vector<8x8xf32>
    %cst_16 = arith.constant dense<0xFF800000> : vector<8xf32>
    %49 = vector.multi_reduction <maximumf>, %48, %cst_16 [1] : vector<8x8xf32> to vector<8xf32>
    %50 = vector.shape_cast %49 : vector<8xf32> to vector<8x1xf32>
    %51 = vector.broadcast %50 : vector<8x1xf32> to vector<8x8xf32>
    %52 = arith.subf %48, %51 : vector<8x8xf32>
    %53 = math.exp %52 : vector<8x8xf32>
    %cst_17 = arith.constant dense<0.000000e+00> : vector<8xf32>
    %54 = vector.multi_reduction <add>, %53, %cst_17 [1] : vector<8x8xf32> to vector<8xf32>
    %55 = vector.shape_cast %54 : vector<8xf32> to vector<8x1xf32>
    %56 = tpu.reciprocal %55 {approx = true} : vector<8x1xf32> -> vector<8x1xf32>
    %57 = vector.broadcast %56 : vector<8x1xf32> to vector<8x8xf32>
    %58 = arith.mulf %53, %57 : vector<8x8xf32>
    %cst_18 = arith.constant dense<0.000000e+00> : vector<8x8xf32>
    %59 = tpu.matmul %58, %43, %cst_18 {dimension_numbers = #tpu.dot_dimension_numbers<[1], [0], [0], [1], [0, 0, 1, 1], [], []>} : vector<8x8xf32>, vector<8x8xf32>, vector<8x8xf32> -> vector<8x8xf32>
    %60 = vector.extract_strided_slice %38 {offsets = [0, 8], sizes = [8, 8], strides = [1, 1]} : vector<8x32xf32> to vector<8x8xf32>
    %61 = vector.extract_strided_slice %39 {offsets = [0, 8], sizes = [8, 8], strides = [1, 1]} : vector<8x32xf32> to vector<8x8xf32>
    %62 = vector.extract_strided_slice %40 {offsets = [0, 8], sizes = [8, 8], strides = [1, 1]} : vector<8x32xf32> to vector<8x8xf32>
    %cst_19 = arith.constant dense<0.000000e+00> : vector<8x8xf32>
    %63 = tpu.matmul %60, %61, %cst_19 {dimension_numbers = #tpu.dot_dimension_numbers<[1], [1], [0], [0], [0, 0, 1, 0], [], []>} : vector<8x8xf32>, vector<8x8xf32>, vector<8x8xf32> -> vector<8x8xf32>
    %cst_20 = arith.constant 0.176776692 : f32
    %64 = vector.broadcast %cst_20 : f32 to vector<8x8xf32>
    %65 = arith.mulf %63, %64 : vector<8x8xf32>
    %cst_21 = arith.constant 0xFF800000 : f32
    %66 = vector.broadcast %cst_21 : f32 to vector<8x8xf32>
    %67 = arith.select %37, %65, %66 : vector<8x8xi1>, vector<8x8xf32>
    %cst_22 = arith.constant dense<0xFF800000> : vector<8xf32>
    %68 = vector.multi_reduction <maximumf>, %67, %cst_22 [1] : vector<8x8xf32> to vector<8xf32>
    %69 = vector.shape_cast %68 : vector<8xf32> to vector<8x1xf32>
    %70 = vector.broadcast %69 : vector<8x1xf32> to vector<8x8xf32>
    %71 = arith.subf %67, %70 : vector<8x8xf32>
    %72 = math.exp %71 : vector<8x8xf32>
    %cst_23 = arith.constant dense<0.000000e+00> : vector<8xf32>
    %73 = vector.multi_reduction <add>, %72, %cst_23 [1] : vector<8x8xf32> to vector<8xf32>
    %74 = vector.shape_cast %73 : vector<8xf32> to vector<8x1xf32>
    %75 = tpu.reciprocal %74 {approx = true} : vector<8x1xf32> -> vector<8x1xf32>
    %76 = vector.broadcast %75 : vector<8x1xf32> to vector<8x8xf32>
    %77 = arith.mulf %72, %76 : vector<8x8xf32>
    %cst_24 = arith.constant dense<0.000000e+00> : vector<8x8xf32>
    %78 = tpu.matmul %77, %62, %cst_24 {dimension_numbers = #tpu.dot_dimension_numbers<[1], [0], [0], [1], [0, 0, 1, 1], [], []>} : vector<8x8xf32>, vector<8x8xf32>, vector<8x8xf32> -> vector<8x8xf32>
    %79 = vector.extract_strided_slice %38 {offsets = [0, 16], sizes = [8, 8], strides = [1, 1]} : vector<8x32xf32> to vector<8x8xf32>
    %80 = vector.extract_strided_slice %39 {offsets = [0, 16], sizes = [8, 8], strides = [1, 1]} : vector<8x32xf32> to vector<8x8xf32>
    %81 = vector.extract_strided_slice %40 {offsets = [0, 16], sizes = [8, 8], strides = [1, 1]} : vector<8x32xf32> to vector<8x8xf32>
    %cst_25 = arith.constant dense<0.000000e+00> : vector<8x8xf32>
    %82 = tpu.matmul %79, %80, %cst_25 {dimension_numbers = #tpu.dot_dimension_numbers<[1], [1], [0], [0], [0, 0, 1, 0], [], []>} : vector<8x8xf32>, vector<8x8xf32>, vector<8x8xf32> -> vector<8x8xf32>
    %cst_26 = arith.constant 0.176776692 : f32
    %83 = vector.broadcast %cst_26 : f32 to vector<8x8xf32>
    %84 = arith.mulf %82, %83 : vector<8x8xf32>
    %cst_27 = arith.constant 0xFF800000 : f32
    %85 = vector.broadcast %cst_27 : f32 to vector<8x8xf32>
    %86 = arith.select %37, %84, %85 : vector<8x8xi1>, vector<8x8xf32>
    %cst_28 = arith.constant dense<0xFF800000> : vector<8xf32>
    %87 = vector.multi_reduction <maximumf>, %86, %cst_28 [1] : vector<8x8xf32> to vector<8xf32>
    %88 = vector.shape_cast %87 : vector<8xf32> to vector<8x1xf32>
    %89 = vector.broadcast %88 : vector<8x1xf32> to vector<8x8xf32>
    %90 = arith.subf %86, %89 : vector<8x8xf32>
    %91 = math.exp %90 : vector<8x8xf32>
    %cst_29 = arith.constant dense<0.000000e+00> : vector<8xf32>
    %92 = vector.multi_reduction <add>, %91, %cst_29 [1] : vector<8x8xf32> to vector<8xf32>
    %93 = vector.shape_cast %92 : vector<8xf32> to vector<8x1xf32>
    %94 = tpu.reciprocal %93 {approx = true} : vector<8x1xf32> -> vector<8x1xf32>
    %95 = vector.broadcast %94 : vector<8x1xf32> to vector<8x8xf32>
    %96 = arith.mulf %91, %95 : vector<8x8xf32>
    %cst_30 = arith.constant dense<0.000000e+00> : vector<8x8xf32>
    %97 = tpu.matmul %96, %81, %cst_30 {dimension_numbers = #tpu.dot_dimension_numbers<[1], [0], [0], [1], [0, 0, 1, 1], [], []>} : vector<8x8xf32>, vector<8x8xf32>, vector<8x8xf32> -> vector<8x8xf32>
    %98 = vector.extract_strided_slice %38 {offsets = [0, 24], sizes = [8, 8], strides = [1, 1]} : vector<8x32xf32> to vector<8x8xf32>
    %99 = vector.extract_strided_slice %39 {offsets = [0, 24], sizes = [8, 8], strides = [1, 1]} : vector<8x32xf32> to vector<8x8xf32>
    %100 = vector.extract_strided_slice %40 {offsets = [0, 24], sizes = [8, 8], strides = [1, 1]} : vector<8x32xf32> to vector<8x8xf32>
    %cst_31 = arith.constant dense<0.000000e+00> : vector<8x8xf32>
    %101 = tpu.matmul %98, %99, %cst_31 {dimension_numbers = #tpu.dot_dimension_numbers<[1], [1], [0], [0], [0, 0, 1, 0], [], []>} : vector<8x8xf32>, vector<8x8xf32>, vector<8x8xf32> -> vector<8x8xf32>
    %cst_32 = arith.constant 0.176776692 : f32
    %102 = vector.broadcast %cst_32 : f32 to vector<8x8xf32>
    %103 = arith.mulf %101, %102 : vector<8x8xf32>
    %cst_33 = arith.constant 0xFF800000 : f32
    %104 = vector.broadcast %cst_33 : f32 to vector<8x8xf32>
    %105 = arith.select %37, %103, %104 : vector<8x8xi1>, vector<8x8xf32>
    %cst_34 = arith.constant dense<0xFF800000> : vector<8xf32>
    %106 = vector.multi_reduction <maximumf>, %105, %cst_34 [1] : vector<8x8xf32> to vector<8xf32>
    %107 = vector.shape_cast %106 : vector<8xf32> to vector<8x1xf32>
    %108 = vector.broadcast %107 : vector<8x1xf32> to vector<8x8xf32>
    %109 = arith.subf %105, %108 : vector<8x8xf32>
    %110 = math.exp %109 : vector<8x8xf32>
    %cst_35 = arith.constant dense<0.000000e+00> : vector<8xf32>
    %111 = vector.multi_reduction <add>, %110, %cst_35 [1] : vector<8x8xf32> to vector<8xf32>
    %112 = vector.shape_cast %111 : vector<8xf32> to vector<8x1xf32>
    %113 = tpu.reciprocal %112 {approx = true} : vector<8x1xf32> -> vector<8x1xf32>
    %114 = vector.broadcast %113 : vector<8x1xf32> to vector<8x8xf32>
    %115 = arith.mulf %110, %114 : vector<8x8xf32>
    %cst_36 = arith.constant dense<0.000000e+00> : vector<8x8xf32>
    %116 = tpu.matmul %115, %100, %cst_36 {dimension_numbers = #tpu.dot_dimension_numbers<[1], [0], [0], [1], [0, 0, 1, 1], [], []>} : vector<8x8xf32>, vector<8x8xf32>, vector<8x8xf32> -> vector<8x8xf32>
    %117 = tpu.concatenate %59, %78, %97, %116 in 1 : vector<8x8xf32>, vector<8x8xf32>, vector<8x8xf32>, vector<8x8xf32> -> vector<8x32xf32>
    %118 = vector.extract_strided_slice %32 {offsets = [8, 0], sizes = [8, 32], strides = [1, 1]} : vector<16x32xf32> to vector<8x32xf32>
    %119 = vector.extract_strided_slice %33 {offsets = [8, 0], sizes = [8, 32], strides = [1, 1]} : vector<16x32xf32> to vector<8x32xf32>
    %120 = vector.extract_strided_slice %34 {offsets = [8, 0], sizes = [8, 32], strides = [1, 1]} : vector<16x32xf32> to vector<8x32xf32>
    %121 = vector.extract_strided_slice %118 {offsets = [0, 0], sizes = [8, 8], strides = [1, 1]} : vector<8x32xf32> to vector<8x8xf32>
    %122 = vector.extract_strided_slice %119 {offsets = [0, 0], sizes = [8, 8], strides = [1, 1]} : vector<8x32xf32> to vector<8x8xf32>
    %123 = vector.extract_strided_slice %120 {offsets = [0, 0], sizes = [8, 8], strides = [1, 1]} : vector<8x32xf32> to vector<8x8xf32>
    %cst_37 = arith.constant dense<0.000000e+00> : vector<8x8xf32>
    %124 = tpu.matmul %121, %122, %cst_37 {dimension_numbers = #tpu.dot_dimension_numbers<[1], [1], [0], [0], [0, 0, 1, 0], [], []>} : vector<8x8xf32>, vector<8x8xf32>, vector<8x8xf32> -> vector<8x8xf32>
    %cst_38 = arith.constant 0.176776692 : f32
    %125 = vector.broadcast %cst_38 : f32 to vector<8x8xf32>
    %126 = arith.mulf %124, %125 : vector<8x8xf32>
    %cst_39 = arith.constant 0xFF800000 : f32
    %127 = vector.broadcast %cst_39 : f32 to vector<8x8xf32>
    %128 = arith.select %37, %126, %127 : vector<8x8xi1>, vector<8x8xf32>
    %cst_40 = arith.constant dense<0xFF800000> : vector<8xf32>
    %129 = vector.multi_reduction <maximumf>, %128, %cst_40 [1] : vector<8x8xf32> to vector<8xf32>
    %130 = vector.shape_cast %129 : vector<8xf32> to vector<8x1xf32>
    %131 = vector.broadcast %130 : vector<8x1xf32> to vector<8x8xf32>
    %132 = arith.subf %128, %131 : vector<8x8xf32>
    %133 = math.exp %132 : vector<8x8xf32>
    %cst_41 = arith.constant dense<0.000000e+00> : vector<8xf32>
    %134 = vector.multi_reduction <add>, %133, %cst_41 [1] : vector<8x8xf32> to vector<8xf32>
    %135 = vector.shape_cast %134 : vector<8xf32> to vector<8x1xf32>
    %136 = tpu.reciprocal %135 {approx = true} : vector<8x1xf32> -> vector<8x1xf32>
    %137 = vector.broadcast %136 : vector<8x1xf32> to vector<8x8xf32>
    %138 = arith.mulf %133, %137 : vector<8x8xf32>
    %cst_42 = arith.constant dense<0.000000e+00> : vector<8x8xf32>
    %139 = tpu.matmul %138, %123, %cst_42 {dimension_numbers = #tpu.dot_dimension_numbers<[1], [0], [0], [1], [0, 0, 1, 1], [], []>} : vector<8x8xf32>, vector<8x8xf32>, vector<8x8xf32> -> vector<8x8xf32>
    %140 = vector.extract_strided_slice %118 {offsets = [0, 8], sizes = [8, 8], strides = [1, 1]} : vector<8x32xf32> to vector<8x8xf32>
    %141 = vector.extract_strided_slice %119 {offsets = [0, 8], sizes = [8, 8], strides = [1, 1]} : vector<8x32xf32> to vector<8x8xf32>
    %142 = vector.extract_strided_slice %120 {offsets = [0, 8], sizes = [8, 8], strides = [1, 1]} : vector<8x32xf32> to vector<8x8xf32>
    %cst_43 = arith.constant dense<0.000000e+00> : vector<8x8xf32>
    %143 = tpu.matmul %140, %141, %cst_43 {dimension_numbers = #tpu.dot_dimension_numbers<[1], [1], [0], [0], [0, 0, 1, 0], [], []>} : vector<8x8xf32>, vector<8x8xf32>, vector<8x8xf32> -> vector<8x8xf32>
    %cst_44 = arith.constant 0.176776692 : f32
    %144 = vector.broadcast %cst_44 : f32 to vector<8x8xf32>
    %145 = arith.mulf %143, %144 : vector<8x8xf32>
    %cst_45 = arith.constant 0xFF800000 : f32
    %146 = vector.broadcast %cst_45 : f32 to vector<8x8xf32>
    %147 = arith.select %37, %145, %146 : vector<8x8xi1>, vector<8x8xf32>
    %cst_46 = arith.constant dense<0xFF800000> : vector<8xf32>
    %148 = vector.multi_reduction <maximumf>, %147, %cst_46 [1] : vector<8x8xf32> to vector<8xf32>
    %149 = vector.shape_cast %148 : vector<8xf32> to vector<8x1xf32>
    %150 = vector.broadcast %149 : vector<8x1xf32> to vector<8x8xf32>
    %151 = arith.subf %147, %150 : vector<8x8xf32>
    %152 = math.exp %151 : vector<8x8xf32>
    %cst_47 = arith.constant dense<0.000000e+00> : vector<8xf32>
    %153 = vector.multi_reduction <add>, %152, %cst_47 [1] : vector<8x8xf32> to vector<8xf32>
    %154 = vector.shape_cast %153 : vector<8xf32> to vector<8x1xf32>
    %155 = tpu.reciprocal %154 {approx = true} : vector<8x1xf32> -> vector<8x1xf32>
    %156 = vector.broadcast %155 : vector<8x1xf32> to vector<8x8xf32>
    %157 = arith.mulf %152, %156 : vector<8x8xf32>
    %cst_48 = arith.constant dense<0.000000e+00> : vector<8x8xf32>
    %158 = tpu.matmul %157, %142, %cst_48 {dimension_numbers = #tpu.dot_dimension_numbers<[1], [0], [0], [1], [0, 0, 1, 1], [], []>} : vector<8x8xf32>, vector<8x8xf32>, vector<8x8xf32> -> vector<8x8xf32>
    %159 = vector.extract_strided_slice %118 {offsets = [0, 16], sizes = [8, 8], strides = [1, 1]} : vector<8x32xf32> to vector<8x8xf32>
    %160 = vector.extract_strided_slice %119 {offsets = [0, 16], sizes = [8, 8], strides = [1, 1]} : vector<8x32xf32> to vector<8x8xf32>
    %161 = vector.extract_strided_slice %120 {offsets = [0, 16], sizes = [8, 8], strides = [1, 1]} : vector<8x32xf32> to vector<8x8xf32>
    %cst_49 = arith.constant dense<0.000000e+00> : vector<8x8xf32>
    %162 = tpu.matmul %159, %160, %cst_49 {dimension_numbers = #tpu.dot_dimension_numbers<[1], [1], [0], [0], [0, 0, 1, 0], [], []>} : vector<8x8xf32>, vector<8x8xf32>, vector<8x8xf32> -> vector<8x8xf32>
    %cst_50 = arith.constant 0.176776692 : f32
    %163 = vector.broadcast %cst_50 : f32 to vector<8x8xf32>
    %164 = arith.mulf %162, %163 : vector<8x8xf32>
    %cst_51 = arith.constant 0xFF800000 : f32
    %165 = vector.broadcast %cst_51 : f32 to vector<8x8xf32>
    %166 = arith.select %37, %164, %165 : vector<8x8xi1>, vector<8x8xf32>
    %cst_52 = arith.constant dense<0xFF800000> : vector<8xf32>
    %167 = vector.multi_reduction <maximumf>, %166, %cst_52 [1] : vector<8x8xf32> to vector<8xf32>
    %168 = vector.shape_cast %167 : vector<8xf32> to vector<8x1xf32>
    %169 = vector.broadcast %168 : vector<8x1xf32> to vector<8x8xf32>
    %170 = arith.subf %166, %169 : vector<8x8xf32>
    %171 = math.exp %170 : vector<8x8xf32>
    %cst_53 = arith.constant dense<0.000000e+00> : vector<8xf32>
    %172 = vector.multi_reduction <add>, %171, %cst_53 [1] : vector<8x8xf32> to vector<8xf32>
    %173 = vector.shape_cast %172 : vector<8xf32> to vector<8x1xf32>
    %174 = tpu.reciprocal %173 {approx = true} : vector<8x1xf32> -> vector<8x1xf32>
    %175 = vector.broadcast %174 : vector<8x1xf32> to vector<8x8xf32>
    %176 = arith.mulf %171, %175 : vector<8x8xf32>
    %cst_54 = arith.constant dense<0.000000e+00> : vector<8x8xf32>
    %177 = tpu.matmul %176, %161, %cst_54 {dimension_numbers = #tpu.dot_dimension_numbers<[1], [0], [0], [1], [0, 0, 1, 1], [], []>} : vector<8x8xf32>, vector<8x8xf32>, vector<8x8xf32> -> vector<8x8xf32>
    %178 = vector.extract_strided_slice %118 {offsets = [0, 24], sizes = [8, 8], strides = [1, 1]} : vector<8x32xf32> to vector<8x8xf32>
    %179 = vector.extract_strided_slice %119 {offsets = [0, 24], sizes = [8, 8], strides = [1, 1]} : vector<8x32xf32> to vector<8x8xf32>
    %180 = vector.extract_strided_slice %120 {offsets = [0, 24], sizes = [8, 8], strides = [1, 1]} : vector<8x32xf32> to vector<8x8xf32>
    %cst_55 = arith.constant dense<0.000000e+00> : vector<8x8xf32>
    %181 = tpu.matmul %178, %179, %cst_55 {dimension_numbers = #tpu.dot_dimension_numbers<[1], [1], [0], [0], [0, 0, 1, 0], [], []>} : vector<8x8xf32>, vector<8x8xf32>, vector<8x8xf32> -> vector<8x8xf32>
    %cst_56 = arith.constant 0.176776692 : f32
    %182 = vector.broadcast %cst_56 : f32 to vector<8x8xf32>
    %183 = arith.mulf %181, %182 : vector<8x8xf32>
    %cst_57 = arith.constant 0xFF800000 : f32
    %184 = vector.broadcast %cst_57 : f32 to vector<8x8xf32>
    %185 = arith.select %37, %183, %184 : vector<8x8xi1>, vector<8x8xf32>
    %cst_58 = arith.constant dense<0xFF800000> : vector<8xf32>
    %186 = vector.multi_reduction <maximumf>, %185, %cst_58 [1] : vector<8x8xf32> to vector<8xf32>
    %187 = vector.shape_cast %186 : vector<8xf32> to vector<8x1xf32>
    %188 = vector.broadcast %187 : vector<8x1xf32> to vector<8x8xf32>
    %189 = arith.subf %185, %188 : vector<8x8xf32>
    %190 = math.exp %189 : vector<8x8xf32>
    %cst_59 = arith.constant dense<0.000000e+00> : vector<8xf32>
    %191 = vector.multi_reduction <add>, %190, %cst_59 [1] : vector<8x8xf32> to vector<8xf32>
    %192 = vector.shape_cast %191 : vector<8xf32> to vector<8x1xf32>
    %193 = tpu.reciprocal %192 {approx = true} : vector<8x1xf32> -> vector<8x1xf32>
    %194 = vector.broadcast %193 : vector<8x1xf32> to vector<8x8xf32>
    %195 = arith.mulf %190, %194 : vector<8x8xf32>
    %cst_60 = arith.constant dense<0.000000e+00> : vector<8x8xf32>
    %196 = tpu.matmul %195, %180, %cst_60 {dimension_numbers = #tpu.dot_dimension_numbers<[1], [0], [0], [1], [0, 0, 1, 1], [], []>} : vector<8x8xf32>, vector<8x8xf32>, vector<8x8xf32> -> vector<8x8xf32>
    %197 = tpu.concatenate %139, %158, %177, %196 in 1 : vector<8x8xf32>, vector<8x8xf32>, vector<8x8xf32>, vector<8x8xf32> -> vector<8x32xf32>
    %198 = tpu.concatenate %117, %197 in 0 : vector<8x32xf32>, vector<8x32xf32> -> vector<16x32xf32>
    %c0_61 = arith.constant 0 : index
    %c0_62 = arith.constant 0 : index
    %199 = vector.load %arg5[%c0_61, %c0_62] : memref<32x32xf32, #tpu.memory_space<vmem>>, vector<32x32xf32>
    %cst_63 = arith.constant dense<0.000000e+00> : vector<16x32xf32>
    %200 = tpu.matmul %198, %199, %cst_63 {dimension_numbers = #tpu.dot_dimension_numbers<[1], [0], [0], [1], [0, 0, 1, 1], [], []>} : vector<16x32xf32>, vector<32x32xf32>, vector<16x32xf32> -> vector<16x32xf32>
    %c0_64 = arith.constant 0 : index
    %c0_65 = arith.constant 0 : index
    %201 = vector.load %arg6[%c0_64, %c0_65] : memref<1x32xf32, #tpu.memory_space<vmem>>, vector<1x32xf32>
    %202 = vector.shape_cast %201 : vector<1x32xf32> to vector<32xf32>
    %203 = vector.shape_cast %202 : vector<32xf32> to vector<1x32xf32>
    %204 = vector.broadcast %203 : vector<1x32xf32> to vector<16x32xf32>
    %205 = arith.addf %200, %204 : vector<16x32xf32>
    %206 = arith.addf %1, %205 : vector<16x32xf32>
    %c0_66 = arith.constant 0 : index
    %c0_67 = arith.constant 0 : index
    %207 = vector.load %arg7[%c0_66, %c0_67] : memref<1x32xf32, #tpu.memory_space<vmem>>, vector<1x32xf32>
    %208 = vector.shape_cast %207 : vector<1x32xf32> to vector<32xf32>
    %c0_68 = arith.constant 0 : index
    %c0_69 = arith.constant 0 : index
    %209 = vector.load %arg8[%c0_68, %c0_69] : memref<1x32xf32, #tpu.memory_space<vmem>>, vector<1x32xf32>
    %210 = vector.shape_cast %209 : vector<1x32xf32> to vector<32xf32>
    %cst_70 = arith.constant dense<0.000000e+00> : vector<16xf32>
    %211 = vector.multi_reduction <add>, %206, %cst_70 [1] : vector<16x32xf32> to vector<16xf32>
    %212 = vector.shape_cast %211 : vector<16xf32> to vector<16x1xf32>
    %cst_71 = arith.constant 3.200000e+01 : f32
    %213 = vector.broadcast %cst_71 : f32 to vector<16x1xf32>
    %214 = arith.divf %212, %213 : vector<16x1xf32>
    %215 = vector.broadcast %214 : vector<16x1xf32> to vector<16x32xf32>
    %216 = arith.subf %206, %215 : vector<16x32xf32>
    %217 = arith.mulf %216, %216 : vector<16x32xf32>
    %cst_72 = arith.constant dense<0.000000e+00> : vector<16xf32>
    %218 = vector.multi_reduction <add>, %217, %cst_72 [1] : vector<16x32xf32> to vector<16xf32>
    %219 = vector.shape_cast %218 : vector<16xf32> to vector<16x1xf32>
    %cst_73 = arith.constant 3.200000e+01 : f32
    %220 = vector.broadcast %cst_73 : f32 to vector<16x1xf32>
    %221 = arith.divf %219, %220 : vector<16x1xf32>
    %222 = vector.broadcast %214 : vector<16x1xf32> to vector<16x32xf32>
    %223 = arith.subf %206, %222 : vector<16x32xf32>
    %cst_74 = arith.constant 9.99999974E-6 : f32
    %224 = vector.broadcast %cst_74 : f32 to vector<16x1xf32>
    %225 = arith.addf %221, %224 : vector<16x1xf32>
    %226 = math.rsqrt %225 : vector<16x1xf32>
    %227 = vector.broadcast %226 : vector<16x1xf32> to vector<16x32xf32>
    %228 = arith.mulf %223, %227 : vector<16x32xf32>
    %229 = vector.shape_cast %208 : vector<32xf32> to vector<1x32xf32>
    %230 = vector.broadcast %229 : vector<1x32xf32> to vector<16x32xf32>
    %231 = arith.mulf %228, %230 : vector<16x32xf32>
    %232 = vector.shape_cast %210 : vector<32xf32> to vector<1x32xf32>
    %233 = vector.broadcast %232 : vector<1x32xf32> to vector<16x32xf32>
    %234 = arith.addf %231, %233 : vector<16x32xf32>
    %c0_75 = arith.constant 0 : index
    %c0_76 = arith.constant 0 : index
    %235 = vector.load %arg9[%c0_75, %c0_76] : memref<32x128xf32, #tpu.memory_space<vmem>>, vector<32x128xf32>
    %cst_77 = arith.constant dense<0.000000e+00> : vector<16x128xf32>
    %236 = tpu.matmul %234, %235, %cst_77 {dimension_numbers = #tpu.dot_dimension_numbers<[1], [0], [0], [1], [0, 0, 1, 1], [], []>} : vector<16x32xf32>, vector<32x128xf32>, vector<16x128xf32> -> vector<16x128xf32>
    %c0_78 = arith.constant 0 : index
    %c0_79 = arith.constant 0 : index
    %237 = vector.load %arg10[%c0_78, %c0_79] : memref<1x128xf32, #tpu.memory_space<vmem>>, vector<1x128xf32>
    %238 = vector.shape_cast %237 : vector<1x128xf32> to vector<128xf32>
    %239 = vector.shape_cast %238 : vector<128xf32> to vector<1x128xf32>
    %240 = vector.broadcast %239 : vector<1x128xf32> to vector<16x128xf32>
    %241 = arith.addf %236, %240 : vector<16x128xf32>
    %cst_80 = arith.constant 0.000000e+00 : f32
    %242 = vector.broadcast %cst_80 : f32 to vector<16x128xf32>
    %243 = arith.maximumf %241, %242 : vector<16x128xf32>
    %c0_81 = arith.constant 0 : index
    %c0_82 = arith.constant 0 : index
    %244 = vector.load %arg11[%c0_81, %c0_82] : memref<128x32xf32, #tpu.memory_space<vmem>>, vector<128x32xf32>
    %cst_83 = arith.constant dense<0.000000e+00> : vector<16x32xf32>
    %245 = tpu.matmul %243, %244, %cst_83 {dimension_numbers = #tpu.dot_dimension_numbers<[1], [0], [0], [1], [0, 0, 1, 1], [], []>} : vector<16x128xf32>, vector<128x32xf32>, vector<16x32xf32> -> vector<16x32xf32>
    %c0_84 = arith.constant 0 : index
    %c0_85 = arith.constant 0 : index
    %246 = vector.load %arg12[%c0_84, %c0_85] : memref<1x32xf32, #tpu.memory_space<vmem>>, vector<1x32xf32>
    %247 = vector.shape_cast %246 : vector<1x32xf32> to vector<32xf32>
    %248 = vector.shape_cast %247 : vector<32xf32> to vector<1x32xf32>
    %249 = vector.broadcast %248 : vector<1x32xf32> to vector<16x32xf32>
    %250 = arith.addf %245, %249 : vector<16x32xf32>
    %251 = arith.addf %206, %250 : vector<16x32xf32>
    %252 = vector.shape_cast %251 : vector<16x32xf32> to vector<2x8x32xf32>
    %c0_86 = arith.constant 0 : index
    %c0_87 = arith.constant 0 : index
    %c0_88 = arith.constant 0 : index
    %253 = vector.load %arg13[%c0_86, %c0_87, %c0_88] : memref<2x8x32xf32, #tpu.memory_space<vmem>>, vector<2x8x32xf32>
    tpu.vector_store %arg13[%c0_86, %c0_87, %c0_88], %252 {strides = array<i32>} : memref<2x8x32xf32, #tpu.memory_space<vmem>>, vector<2x8x32xf32>,
    return
  }
  func.func @transform_0(%arg0: i32) -> (i32, i32, i32) {
    %c0_i32 = arith.constant 0 : i32
    %c0_i32_0 = arith.constant 0 : i32
    %c0_i32_1 = arith.constant 0 : i32
    %c0_i32_2 = arith.constant 0 : i32
    return %c0_i32, %c0_i32_0, %c0_i32_1 : i32, i32, i32
  }
  func.func @transform_1(%arg0: i32) -> (i32, i32) {
    %c0_i32 = arith.constant 0 : i32
    %c0_i32_0 = arith.constant 0 : i32
    %c0_i32_1 = arith.constant 0 : i32
    return %c0_i32, %c0_i32_0 : i32, i32
  }
  func.func @transform_2(%arg0: i32) -> (i32, i32) {
    %c0_i32 = arith.constant 0 : i32
    %c0_i32_0 = arith.constant 0 : i32
    %c0_i32_1 = arith.constant 0 : i32
    return %c0_i32, %c0_i32_0 : i32, i32
  }
  func.func @transform_3(%arg0: i32) -> (i32, i32) {
    %c0_i32 = arith.constant 0 : i32
    %c0_i32_0 = arith.constant 0 : i32
    %c0_i32_1 = arith.constant 0 : i32
    return %c0_i32, %c0_i32_0 : i32, i32
  }
  func.func @transform_4(%arg0: i32) -> (i32, i32) {
    %c0_i32 = arith.constant 0 : i32
    %c0_i32_0 = arith.constant 0 : i32
    %c0_i32_1 = arith.constant 0 : i32
    return %c0_i32, %c0_i32_0 : i32, i32
  }
  func.func @transform_5(%arg0: i32) -> (i32, i32) {
    %c0_i32 = arith.constant 0 : i32
    %c0_i32_0 = arith.constant 0 : i32
    %c0_i32_1 = arith.constant 0 : i32
    return %c0_i32, %c0_i32_0 : i32, i32
  }
  func.func @transform_6(%arg0: i32) -> (i32, i32) {
    %c0_i32 = arith.constant 0 : i32
    %c0_i32_0 = arith.constant 0 : i32
    %c0_i32_1 = arith.constant 0 : i32
    return %c0_i32, %c0_i32_0 : i32, i32
  }
  func.func @transform_7(%arg0: i32) -> (i32, i32) {
    %c0_i32 = arith.constant 0 : i32
    %c0_i32_0 = arith.constant 0 : i32
    %c0_i32_1 = arith.constant 0 : i32
    return %c0_i32, %c0_i32_0 : i32, i32
  }
  func.func @transform_8(%arg0: i32) -> (i32, i32) {
    %c0_i32 = arith.constant 0 : i32
    %c0_i32_0 = arith.constant 0 : i32
    %c0_i32_1 = arith.constant 0 : i32
    return %c0_i32, %c0_i32_0 : i32, i32
  }
  func.func @transform_9(%arg0: i32) -> (i32, i32) {
    %c0_i32 = arith.constant 0 : i32
    %c0_i32_0 = arith.constant 0 : i32
    %c0_i32_1 = arith.constant 0 : i32
    return %c0_i32, %c0_i32_0 : i32, i32
  }
  func.func @transform_10(%arg0: i32) -> (i32, i32) {
    %c0_i32 = arith.constant 0 : i32
    %c0_i32_0 = arith.constant 0 : i32
    %c0_i32_1 = arith.constant 0 : i32
    return %c0_i32, %c0_i32_0 : i32, i32
  }
  func.func @transform_11(%arg0: i32) -> (i32, i32) {
    %c0_i32 = arith.constant 0 : i32
    %c0_i32_0 = arith.constant 0 : i32
    %c0_i32_1 = arith.constant 0 : i32
    return %c0_i32, %c0_i32_0 : i32, i32
  }
  func.func @transform_12(%arg0: i32) -> (i32, i32, i32) {
    %c0_i32 = arith.constant 0 : i32
    %c0_i32_0 = arith.constant 0 : i32
    %c0_i32_1 = arith.constant 0 : i32
    %c0_i32_2 = arith.constant 0 : i32
    return %c0_i32, %c0_i32_0, %c0_i32_1 : i32, i32, i32
  }
}

</mosaic_0001>

<bundles_post_ra>
// kernel: tpu_custom_call.1
= control target key start
LH: loop header
LB: loop body
LE: loop exit
PB: predicated region body
PF: predicated region fallthrough
CT: control target
= control target key end

     0   :  { %vm46_vm0 = vcmask 261120   ;;  %s2646_s0 = inlined_call_operand.vmem [shape: f32[2,8,32], index: 0, kind: input, shape index: {}]   ;;  %s2647_s1 = inlined_call_operand.vmem [shape: f32[1,32], index: 1, kind: input, shape index: {}]   ;;  %s2648_s2 = inlined_call_operand.vmem [shape: f32[1,32], index: 2, kind: input, shape index: {}]   ;;  %s2649_s3 = inlined_call_operand.vmem [shape: f32[32,96], index: 3, kind: input, shape index: {}]   ;;  %s2650_s4 = inlined_call_operand.vmem [shape: f32[32,32], index: 4, kind: input, shape index: {}]   ;;  %s2651_s5 = inlined_call_operand.vmem [shape: f32[1,32], index: 5, kind: input, shape index: {}]   ;;  %s2652_s6 = inlined_call_operand.vmem [shape: f32[1,32], index: 6, kind: input, shape index: {}]   ;;  %s2653_s7 = inlined_call_operand.vmem [shape: f32[1,32], index: 7, kind: input, shape index: {}]   ;;  %s2654_s8 = inlined_call_operand.vmem [shape: f32[32,128], index: 8, kind: input, shape index: {}]   ;;  %s2655_s9 = inlined_call_operand.vmem [shape: f32[1,128], index: 9, kind: input, shape index: {}]   ;;  %s2656_s10 = inlined_call_operand.vmem [shape: f32[128,32], index: 10, kind: input, shape index: {}]   ;;  %s2657_s11 = inlined_call_operand.vmem [shape: f32[1,32], index: 11, kind: input, shape index: {}]   ;;  %s2658_s12 = inlined_call_operand.hbm [shape: f32[2,8,32], index: 12, kind: output, shape index: {}]  }
   0x1   :  { %v2316_v0 = vld [vmem:[%s2646_s0] sm:$0xff]  ;;  %v2321_v1 = vld [vmem:[%s2646_s0 + $0x8] sm:$0xff] }
   0x2   :  { %17 = vsyncpa [#allocation3], 0  ;;  %v47_v2 = vsel %vm46_vm0, %v2316_v0, 0.0  ;;  %v50_v3 = vsel %vm46_vm0, %v2321_v1, 0.0  ;;  %v93_v14 = vld [vmem:[%s2649_s3 + $0x18] sm:$0xff]  ;;  %v92_v15 = vld [vmem:[%s2649_s3 + $0x10] sm:$0xff]  ;;  %v175_v51 = vlaneseq }
   0x3   :  { %48 = vadd.xlane.f32.xlu0 %v47_v2  ;;  %2002 = vmatprep.subr.mxu1 %v93_v14  ;;  %v91_v16 = vld [vmem:[%s2649_s3 + $0x8] sm:$0xff]  ;;  %v90_v17 = vld [vmem:[%s2649_s3] sm:$0xff]  ;;  %v2230_v34 = vmov 0.0   ;;  %vm2231_vm1 = vmmov 0   ;;  %s2234_s3 = smov 120   ;;  %s2235_s18 = smov 112  }
   0x4   :  { %2003 = vmatpush3.msra.mxu1 %v93_v14  ;;  %v1897_v25 = vld [vmem:[%s2647_s1] ss:$0 sm:$0xff]  ;;  %2023 = vmatprep.subr.mxu0 %v2230_v34  ;;  %s2232_s1 = smov 88   ;;  %s2236_s19 = smov 80   ;;  %vm183_vm2 = vcmask 64512   ;;  %v176_v52 = vshrl.u32 %v175_v51, 7 }
   0x5   :  { %2004 = vmatprep.subr.mxu1 %v92_v15  ;;  %v1898_v27 = vld [vmem:[%s2648_s2] ss:$0 sm:$0xff]  ;;  %2025 = vmatprep.mubr.msk.f32.mxu0 %vm2231_vm1, %v2230_v34  ;;  %s2233_s2 = smov 96   ;;  %s2237_s20 = smov 104   ;;  %v178_v53 = vand.u32 127, %v175_v51  ;;  %vm861_vm4 = vcmask 130048  }
   0x6   :  { %2005 = vmatpush3.msra.mxu1 %v92_v15  ;;  %s2238_s21 = smov 72   ;;  %s2239_s22 = smov 64   ;;  %vm863_vm5 = vcmask 195584  }
   0x7   :  { %51 = vadd.xlane.f32.xlu0 %v50_v3  ;;  %2006 = vmatprep.subr.mxu1 %v91_v16  ;;  %vm2414_vm3 = vcmp.le.s32.totalorder %v178_v53, %v176_v52  ;;  %s2240_s23 = smov 48   ;;  %s2241_s24 = smov 40  }
   0x8   :  { %2007 = vmatpush3.msra.mxu1 %v91_v16  ;;  %s2242_s0 = smov 56   ;;  %s2243_s25 = smov 8  }
   0x9   :  { %2008 = vmatprep.subr.mxu1 %v90_v17  ;;  %s2244_s30 = smov 16   ;;  %s2245_s17 = smov 24  }
   0xa   :  { %2009 = vmatpush3.msra.mxu1 %v90_v17 }
   0xb   :  { %2013 = vmatprep.subr.mxu1 %v2230_v34 }
  0x8c   :  { %v49_v4 = vpop.xlane.xlu0 %48 }
  0x8d   :  { %v54_v5 = vmul.f32 0.03125, %v49_v4 }
  0x8f   :  { %v56_v6 = vsub.f32 %v2316_v0, %v54_v5 }
  0x90   :  { %v52_v7 = vpop.xlane.xlu0 %51 }
  0x91   :  { %v55_v8 = vmul.f32 0.03125, %v52_v7  ;;  %v58_v9 = vmul.f32 %v56_v6, %v56_v6 }
  0x93   :  { %v57_v10 = vsub.f32 %v2321_v1, %v55_v8  ;;  %v60_v11 = vsel %vm46_vm0, %v58_v9, 0.0 }
  0x94   :  { %61 = vadd.xlane.f32.xlu1 %v60_v11 }
  0x95   :  { %v59_v12 = vmul.f32 %v57_v10, %v57_v10 }
  0x97   :  { %v63_v13 = vsel %vm46_vm0, %v59_v12, 0.0 }
  0x98   :  { %64 = vadd.xlane.f32.xlu1 %v63_v13 }
 0x11d   :  { %v62_v18 = vpop.xlane.xlu1 %61 }
 0x11e   :  { %v66_v19 = vmul.f32 0.03125, %v62_v18 }
 0x120   :  { %v68_v20 = vadd.f32 1e-05, %v66_v19 }
 0x121   :  { %v65_v21 = vpop.xlane.xlu1 %64 }
 0x122   :  { %2168 = vrsqrt.f32 %v68_v20  ;;  %v67_v22 = vmul.f32 0.03125, %v65_v21 }
 0x124   :  { %v69_v23 = vadd.f32 1e-05, %v67_v22 }
 0x126   :  { %2170 = vrsqrt.f32 %v69_v23 }
 0x12f   :  { %v2169_v24 = vpop.eup %2168 }
 0x130   :  { %v72_v26 = vmul.f32 %v2169_v24, %v56_v6 }
 0x132   :  { %v80_v28 = vmul.f32 %v1897_v25, %v72_v26 }
 0x133   :  { %v2171_v29 = vpop.eup %2170 }
 0x134   :  { %v73_v30 = vmul.f32 %v2171_v29, %v57_v10  ;;  %v88_v31 = vadd.f32 %v1898_v27, %v80_v28 }
 0x136   :  { %v81_v32 = vmul.f32 %v1897_v25, %v73_v30  ;;  %2010 = vmatprep.mubr.msk.f32.mxu1 %vm46_vm0, %v88_v31 }
 0x138   :  { %v89_v33 = vadd.f32 %v1898_v27, %v81_v32 }
 0x13a   :  { %2011 = vmatmul.mubr.msk.f32.vlgmr.msra.gmra.mxu1 %vm46_vm0, %v89_v33 }
 0x13b   :  { %2015 = vmatprep.mubr.msk.f32.mxu1 %vm2231_vm1, %v2230_v34 }
 0x1fa   :  { %v2357_v35 = vpop.f32.mrf.mxu1 }
 0x1fc   :  { %v2359_v36 = vpop.f32.mrf.mxu1 }
 0x1fd   :  { %349 = vrot.lane.b32.xlu1 %v2359_v36, %s2232_s1  ;;  %181 = vrot.lane.b32.xlu0 %v2359_v36, %s2233_s2 }
 0x201   :  { %347 = vrot.lane.b32.xlu1 %v2359_v36, %s2234_s3  ;;  %514 = vrot.lane.b32.xlu0 %v2359_v36, %s2235_s18 }
 0x205   :  { %516 = vrot.lane.b32.xlu1 %v2359_v36, %s2236_s19  ;;  %681 = vrot.lane.b32.xlu0 %v2359_v36, %s2237_s20 }
 0x209   :  { %683 = vrot.lane.b32.xlu1 %v2359_v36, %s2238_s21  ;;  %1033 = vrot.lane.b32.xlu0 %v2357_v35, %s2232_s1 }
 0x20d   :  { %866 = vrot.lane.b32.xlu1 %v2357_v35, %s2233_s2  ;;  %1200 = vrot.lane.b32.xlu0 %v2357_v35, %s2236_s19 }
 0x211   :  { %1031 = vrot.lane.b32.xlu1 %v2357_v35, %s2234_s3  ;;  %1367 = vrot.lane.b32.xlu0 %v2357_v35, %s2238_s21 }
 0x215   :  { %1198 = vrot.lane.b32.xlu1 %v2357_v35, %s2235_s18 }
 0x219   :  { %1365 = vrot.lane.b32.xlu1 %v2357_v35, %s2237_s20 }
 0x26f   :  { %v350_v37 = vpop.permute.xlu1 %349  ;;  %v182_v38 = vpop.permute.xlu0 %181 }
 0x270   :  { %2014 = vmatpush3.xpose.msk.msra.mxu1 %vm183_vm2, %v182_v38  ;;  %2024 = vmatpush3.xpose.msk.msra.mxu0 %vm183_vm2, %v350_v37 }
 0x271   :  { %2033 = vmatprep.subr.mxu0 %v2230_v34  ;;  %2018 = vmatprep.subr.mxu1 %v2230_v34 }
 0x273   :  { %v348_v39 = vpop.permute.xlu1 %347  ;;  %2016 = vmatmul.mubr.msk.f32.vlgmr.msra.gmra.mxu1 %vm183_vm2, %v2359_v36  ;;  %v515_v40 = vpop.permute.xlu0 %514 }
 0x274   :  { %2026 = vmatmul.mubr.msk.f32.vlgmr.msra.gmra.mxu0 %vm183_vm2, %v348_v39  ;;  %2020 = vmatprep.mubr.msk.f32.mxu1 %vm2231_vm1, %v2230_v34 }
 0x275   :  { %2035 = vmatprep.mubr.msk.f32.mxu0 %vm2231_vm1, %v2230_v34 }
 0x277   :  { %v517_v41 = vpop.permute.xlu1 %516  ;;  %v682_v42 = vpop.permute.xlu0 %681 }
 0x278   :  { %2034 = vmatpush3.xpose.msk.msra.mxu0 %vm183_vm2, %v517_v41 }
 0x279   :  { %2043 = vmatprep.subr.mxu0 %v2230_v34 }
 0x27b   :  { %v684_v43 = vpop.permute.xlu1 %683  ;;  %2036 = vmatmul.mubr.msk.f32.vlgmr.msra.gmra.mxu0 %vm183_vm2, %v515_v40  ;;  %v1034_v44 = vpop.permute.xlu0 %1033 }
 0x27c   :  { %2044 = vmatpush3.xpose.msk.msra.mxu0 %vm183_vm2, %v684_v43  ;;  %2045 = vmatprep.mubr.msk.f32.mxu0 %vm2231_vm1, %v2230_v34 }
 0x27d   :  { %2053 = vmatprep.subr.mxu0 %v2230_v34 }
 0x27f   :  { %v867_v45 = vpop.permute.xlu1 %866  ;;  %2046 = vmatmul.mubr.msk.f32.vlgmr.msra.gmra.mxu0 %vm183_vm2, %v682_v42  ;;  %v1201_v47 = vpop.permute.xlu0 %1200 }
 0x280   :  { %2054 = vmatpush3.xpose.msk.msra.mxu0 %vm183_vm2, %v867_v45  ;;  %2055 = vmatprep.mubr.msk.f32.mxu0 %vm2231_vm1, %v2230_v34 }
 0x281   :  { %2063 = vmatprep.subr.mxu0 %v2230_v34 }
 0x283   :  { %v1032_v46 = vpop.permute.xlu1 %1031  ;;  %2056 = vmatmul.mubr.msk.f32.vlgmr.msra.gmra.mxu0 %vm183_vm2, %v2357_v35  ;;  %v1368_v49 = vpop.permute.xlu0 %1367 }
 0x284   :  { %2064 = vmatpush3.xpose.msk.msra.mxu0 %vm183_vm2, %v1034_v44  ;;  %2065 = vmatprep.mubr.msk.f32.mxu0 %vm2231_vm1, %v2230_v34 }
 0x285   :  { %2073 = vmatprep.subr.mxu0 %v2230_v34 }
 0x287   :  { %2066 = vmatmul.mubr.msk.f32.vlgmr.msra.gmra.mxu0 %vm183_vm2, %v1032_v46  ;;  %v1199_v48 = vpop.permute.xlu1 %1198 }
 0x288   :  { %2074 = vmatpush3.xpose.msk.msra.mxu0 %vm183_vm2, %v1201_v47  ;;  %2075 = vmatprep.mubr.msk.f32.mxu0 %vm2231_vm1, %v2230_v34 }
 0x289   :  { %2083 = vmatprep.subr.mxu0 %v2230_v34 }
 0x28b   :  { %2076 = vmatmul.mubr.msk.f32.vlgmr.msra.gmra.mxu0 %vm183_vm2, %v1199_v48  ;;  %v1366_v50 = vpop.permute.xlu1 %1365 }
 0x28c   :  { %2084 = vmatpush3.xpose.msk.msra.mxu0 %vm183_vm2, %v1368_v49  ;;  %2085 = vmatprep.mubr.msk.f32.mxu0 %vm2231_vm1, %v2230_v34 }
 0x28f   :  { %2086 = vmatmul.mubr.msk.f32.vlgmr.msra.gmra.mxu0 %vm183_vm2, %v1366_v50 }
 0x333   :  { %v254_v54 = vpop.f32.mrf.mxu1 }
 0x334   :  { %v258_v56 = vmul.f32 0.17677669, %v254_v54  ;;  %v421_v57 = vpop.f32.mrf.mxu0 }
 0x335   :  { %v425_v58 = vmul.f32 0.17677669, %v421_v57  ;;  %v2017_v59 = vpop.f32.mrf.mxu1 }
 0x336   :  { %v2027_v60 = vpop.f32.mrf.mxu0  ;;  %v259_v61 = vsel %vm2414_vm3, %v258_v56, -inf }
 0x337   :  { %v260_v62 = vsel %vm183_vm2, %v259_v61, -inf  ;;  %v426_v63 = vsel %vm2414_vm3, %v425_v58, -inf }
 0x338   :  { %261 = vmax.xlane.f32.xlu0 %v260_v62  ;;  %v427_v2 = vsel %vm183_vm2, %v426_v63, -inf }
 0x339   :  { %428 = vmax.xlane.f32.xlu1 %v427_v2 }
 0x33b   :  { %v588_v3 = vpop.f32.mrf.mxu0 }
 0x33c   :  { %v592_v4 = vmul.f32 0.17677669, %v588_v3 }
 0x33d   :  { %v2037_v5 = vpop.f32.mrf.mxu0 }
 0x33e   :  { %v2426_v6 = vsel %vm2414_vm3, %v592_v4, -inf }
 0x33f   :  { %v755_v7 = vpop.f32.mrf.mxu0  ;;  %v594_v8 = vsel %vm183_vm2, %v2426_v6, -inf }
 0x340   :  { %v759_v9 = vmul.f32 0.17677669, %v755_v7  ;;  %595 = vmax.xlane.f32.xlu0 %v594_v8 }
 0x341   :  { %v2047_v10 = vpop.f32.mrf.mxu0 }
 0x342   :  { %v760_v11 = vsel %vm2414_vm3, %v759_v9, -inf }
 0x343   :  { %v938_v12 = vpop.f32.mrf.mxu0  ;;  %v761_v13 = vsel %vm183_vm2, %v760_v11, -inf }
 0x344   :  { %v942_v14 = vmul.f32 0.17677669, %v938_v12  ;;  %762 = vmax.xlane.f32.xlu0 %v761_v13 }
 0x345   :  { %v2057_v15 = vpop.f32.mrf.mxu0 }
 0x346   :  { %v2435_v16 = vsel %vm2414_vm3, %v942_v14, -inf }
 0x347   :  { %v1105_v17 = vpop.f32.mrf.mxu0  ;;  %v944_v18 = vsel %vm183_vm2, %v2435_v16, -inf }
 0x348   :  { %v1109_v19 = vmul.f32 0.17677669, %v1105_v17  ;;  %945 = vmax.xlane.f32.xlu0 %v944_v18 }
 0x349   :  { %v2067_v20 = vpop.f32.mrf.mxu0 }
 0x34a   :  { %v1110_v21 = vsel %vm2414_vm3, %v1109_v19, -inf }
 0x34b   :  { %v1272_v22 = vpop.f32.mrf.mxu0  ;;  %v1111_v23 = vsel %vm183_vm2, %v1110_v21, -inf }
 0x34c   :  { %v1276_v24 = vmul.f32 0.17677669, %v1272_v22  ;;  %1112 = vmax.xlane.f32.xlu1 %v1111_v23 }
 0x34d   :  { %v2077_v25 = vpop.f32.mrf.mxu0 }
 0x34e   :  { %v1277_v26 = vsel %vm2414_vm3, %v1276_v24, -inf }
 0x34f   :  { %v1439_v27 = vpop.f32.mrf.mxu0  ;;  %v1278_v28 = vsel %vm183_vm2, %v1277_v26, -inf }
 0x350   :  { %1279 = vmax.xlane.f32.xlu0 %v1278_v28  ;;  %v1443_v30 = vmul.f32 0.17677669, %v1439_v27 }
 0x351   :  { %v2087_v29 = vpop.f32.mrf.mxu0 }
 0x352   :  { %v1444_v31 = vsel %vm2414_vm3, %v1443_v30, -inf }
 0x353   :  { %v1445_v32 = vsel %vm183_vm2, %v1444_v31, -inf }
 0x35d   :  { %271 = vrot.lane.b32.xlu1 %v2359_v36, %s2239_s22 }
 0x381   :  { %1446 = vmax.xlane.f32.xlu1 %v1445_v32 }
 0x392   :  { %605 = vrot.lane.b32.xlu1 %v2359_v36, %s2240_s23 }
 0x396   :  { %772 = vrot.lane.b32.xlu1 %v2359_v36, %s2241_s24 }
 0x39a   :  { %955 = vrot.lane.b32.xlu1 %v2357_v35, %s2239_s22 }
 0x3c1   :  { %v262_v33 = vpop.xlane.xlu0 %261 }
 0x3c2   :  { %v263_v37 = vsub.f32 %v259_v61, %v262_v33  ;;  %v429_v38 = vpop.xlane.xlu1 %428 }
 0x3c3   :  { %v430_v39 = vsub.f32 %v426_v63, %v429_v38 }
 0x3c4   :  { %v264_v40 = vmul.f32 1.442695, %v263_v37 }
 0x3c5   :  { %v431_v41 = vmul.f32 1.442695, %v430_v39 }
 0x3c6   :  { %2172 = vpow2.f32 %v264_v40 }
 0x3c7   :  { %2174 = vpow2.f32 %v431_v41 }
 0x3c9   :  { %v596_v42 = vpop.xlane.xlu0 %595 }
 0x3ca   :  { %v597_v54 = vsub.f32 %v2426_v6, %v596_v42 }
 0x3cc   :  { %v598_v56 = vmul.f32 1.442695, %v597_v54 }
 0x3cd   :  { %v763_v43 = vpop.xlane.xlu0 %762 }
 0x3ce   :  { %v764_v44 = vsub.f32 %v760_v11, %v763_v43 }
 0x3d0   :  { %v765_v45 = vmul.f32 1.442695, %v764_v44 }
 0x3d1   :  { %v946_v55 = vpop.xlane.xlu0 %945 }
 0x3d2   :  { %2176 = vpow2.f32 %v765_v45  ;;  %v947_v57 = vsub.f32 %v2435_v16, %v946_v55  ;;  %v1548_v55 = vld [vmem:[%s2650_s4 + $0x8] sm:$0xff] }
 0x3d3   :  { %v2173_v46 = vpop.eup %2172  ;;  %2178 = vpow2.f32 %v598_v56  ;;  %v1547_v56 = vld [vmem:[%s2650_s4] sm:$0xff] }
 0x3d4   :  { %v2454_v47 = vpop.eup %2174  ;;  %v266_v48 = vsel %vm183_vm2, %v2173_v46, 0.0  ;;  %v948_v59 = vmul.f32 1.442695, %v947_v57 }
 0x3d5   :  { %v1113_v49 = vpop.xlane.xlu1 %1112  ;;  %267 = vadd.xlane.f32.xlu0 %v266_v48  ;;  %v433_v50 = vsel %vm183_vm2, %v2454_v47, 0.0 }
 0x3d6   :  { %434 = vadd.xlane.f32.xlu1 %v433_v50  ;;  %2180 = vpow2.f32 %v948_v59  ;;  %v1114_v61 = vsub.f32 %v1110_v21, %v1113_v49 }
 0x3d8   :  { %v1115_v63 = vmul.f32 1.442695, %v1114_v61 }
 0x3d9   :  { %v272_v51 = vpop.permute.xlu1 %271  ;;  %v1280_v58 = vpop.xlane.xlu0 %1279 }
 0x3da   :  { %2019 = vmatpush3.msra.mxu1 %v272_v51  ;;  %v1281_v60 = vsub.f32 %v1277_v26, %v1280_v58 }
 0x3db   :  { %2028 = vmatprep.subr.mxu1 %v2230_v34 }
 0x3dc   :  { %v1282_v62 = vmul.f32 1.442695, %v1281_v60 }
 0x3de   :  { %2182 = vpow2.f32 %v1282_v62 }
 0x3df   :  { %v2460_v52 = vpop.eup %2176  ;;  %2184 = vpow2.f32 %v1115_v63 }
 0x3e0   :  { %v767_v53 = vsel %vm183_vm2, %v2460_v52, 0.0  ;;  %v2179_v2 = vpop.eup %2178 }
 0x3e1   :  { %768 = vadd.xlane.f32.xlu1 %v767_v53 }
 0x3e3   :  { %v2469_v3 = vpop.eup %2180 }
 0x3e4   :  { %v950_v7 = vsel %vm183_vm2, %v2469_v3, 0.0 }
 0x3eb   :  { %438 = vrot.lane.b32.xlu0 %v2359_v36, %s2242_s0  ;;  %v600_v36 = vsel %vm183_vm2, %v2179_v2, 0.0  ;;  %v2473_v8 = vpop.eup %2182 }
 0x3ec   :  { %v1284_v9 = vsel %vm183_vm2, %v2473_v8, 0.0  ;;  %v2185_v10 = vpop.eup %2184 }
 0x3ed   :  { %v1117_v11 = vsel %vm183_vm2, %v2185_v10, 0.0 }
 0x3f2   :  { %1122 = vrot.lane.b32.xlu1 %v2357_v35, %s2242_s0 }
 0x40a   :  { %v1447_v4 = vpop.xlane.xlu1 %1446  ;;  %601 = vadd.xlane.f32.xlu0 %v600_v36 }
 0x40b   :  { %v1448_v5 = vsub.f32 %v1444_v31, %v1447_v4 }
 0x40d   :  { %v1449_v6 = vmul.f32 1.442695, %v1448_v5 }
 0x40e   :  { %951 = vadd.xlane.f32.xlu0 %v950_v7  ;;  %v606_v14 = vpop.permute.xlu1 %605 }
 0x40f   :  { %2186 = vpow2.f32 %v1449_v6 }
 0x412   :  { %1285 = vadd.xlane.f32.xlu0 %v1284_v9  ;;  %v773_v15 = vpop.permute.xlu1 %772 }
 0x416   :  { %1118 = vadd.xlane.f32.xlu1 %v1117_v11  ;;  %v956_v16 = vpop.permute.xlu1 %955 }
 0x41c   :  { %v2478_v12 = vpop.eup %2186 }
 0x41d   :  { %v1451_v13 = vsel %vm183_vm2, %v2478_v12, 0.0 }
 0x41e   :  { %1452 = vadd.xlane.f32.xlu0 %v1451_v13 }
 0x427   :  { %1456 = vrot.lane.b32.xlu1 %v2357_v35, %s2241_s24 }
 0x434   :  { %1289 = vrot.lane.b32.xlu0 %v2357_v35, %s2240_s23 }
 0x45e   :  { %v268_v17 = vpop.xlane.xlu0 %267 }
 0x45f   :  { %2188 = vrcp.f32 %v268_v17  ;;  %v435_v18 = vpop.xlane.xlu1 %434 }
 0x460   :  { %2190 = vrcp.f32 %v435_v18 }
 0x462   :  { %v439_v22 = vpop.permute.xlu0 %438 }
 0x46a   :  { %v769_v23 = vpop.xlane.xlu1 %768 }
 0x46c   :  { %v2189_v19 = vpop.eup %2188 }
 0x46d   :  { %v270_v20 = vmul.f32 %v2189_v19, %v2173_v46  ;;  %v2191_v21 = vpop.eup %2190 }
 0x46e   :  { %v437_v35 = vmul.f32 %v2191_v21, %v2454_v47  ;;  %v1123_v26 = vpop.permute.xlu1 %1122 }
 0x46f   :  { %2021 = vmatmul.mubr.msk.f32.vlgmr.msra.gmra.mxu1 %vm183_vm2, %v270_v20 }
 0x470   :  { %2029 = vmatpush3.msra.mxu1 %v439_v22  ;;  %2030 = vmatprep.mubr.msk.f32.mxu1 %vm2231_vm1, %v2230_v34 }
 0x471   :  { %2038 = vmatprep.subr.mxu1 %v2230_v34 }
 0x473   :  { %2031 = vmatmul.mubr.msk.f32.vlgmr.msra.gmra.mxu1 %vm183_vm2, %v437_v35 }
 0x474   :  { %2039 = vmatpush3.msra.mxu1 %v606_v14  ;;  %2040 = vmatprep.mubr.msk.f32.mxu1 %vm2231_vm1, %v2230_v34 }
 0x475   :  { %2048 = vmatprep.subr.mxu1 %v2230_v34 }
 0x493   :  { %v602_v24 = vpop.xlane.xlu0 %601 }
 0x494   :  { %2192 = vrcp.f32 %v602_v24 }
 0x495   :  { %2194 = vrcp.f32 %v769_v23 }
 0x497   :  { %v952_v25 = vpop.xlane.xlu0 %951 }
 0x498   :  { %2196 = vrcp.f32 %v952_v25 }
 0x49b   :  { %v1286_v27 = vpop.xlane.xlu0 %1285 }
 0x49f   :  { %v1119_v28 = vpop.xlane.xlu1 %1118 }
 0x4a0   :  { %2198 = vrcp.f32 %v1119_v28 }
 0x4a1   :  { %v2193_v29 = vpop.eup %2192  ;;  %2200 = vrcp.f32 %v1286_v27 }
 0x4a2   :  { %v604_v30 = vmul.f32 %v2193_v29, %v2179_v2  ;;  %v2195_v31 = vpop.eup %2194 }
 0x4a3   :  { %v771_v32 = vmul.f32 %v2195_v31, %v2460_v52  ;;  %v1457_v44 = vpop.permute.xlu1 %1456  ;;  %v1550_v52 = vld [vmem:[%s2650_s4 + $0x18] sm:$0xff] }
 0x4a4   :  { %2041 = vmatmul.mubr.msk.f32.vlgmr.msra.gmra.mxu1 %vm183_vm2, %v604_v30  ;;  %v1688_v31 = vld [vmem:[%s2654_s8 + $0x18] sm:$0xff] }
 0x4a5   :  { %2049 = vmatpush3.msra.mxu1 %v773_v15  ;;  %2050 = vmatprep.mubr.msk.f32.mxu1 %vm2231_vm1, %v2230_v34  ;;  %v2197_v33 = vpop.eup %2196  ;;  %v1925_v15 = vld [vmem:[%s2651_s5] ss:$0 sm:$0xff] }
 0x4a6   :  { %2058 = vmatprep.subr.mxu1 %v2230_v34  ;;  %v954_v38 = vmul.f32 %v2197_v33, %v2469_v3  ;;  %v1686_v33 = vld [vmem:[%s2654_s8 + $0x8] sm:$0xff] }
 0x4a7   :  { %v1453_v37 = vpop.xlane.xlu0 %1452 }
 0x4a8   :  { %2202 = vrcp.f32 %v1453_v37  ;;  %2051 = vmatmul.mubr.msk.f32.vlgmr.msra.gmra.mxu1 %vm183_vm2, %v771_v32  ;;  %v1687_v32 = vld [vmem:[%s2654_s8 + $0x10] sm:$0xff]  ;;  %v1685_v37 = vld [vmem:[%s2654_s8] sm:$0xff] }
 0x4a9   :  { %2059 = vmatpush3.msra.mxu1 %v956_v16  ;;  %2060 = vmatprep.mubr.msk.f32.mxu1 %vm2231_vm1, %v2230_v34 }
 0x4aa   :  { %2068 = vmatprep.subr.mxu1 %v2230_v34 }
 0x4ab   :  { %v1290_v42 = vpop.permute.xlu0 %1289 }
 0x4ac   :  { %2061 = vmatmul.mubr.msk.f32.vlgmr.msra.gmra.mxu1 %vm183_vm2, %v954_v38  ;;  %v1794_v38 = vld [vmem:[%s2656_s10 + $0x78] sm:$0xff] }
 0x4ad   :  { %v2199_v39 = vpop.eup %2198  ;;  %2069 = vmatpush3.msra.mxu1 %v1123_v26  ;;  %2070 = vmatprep.mubr.msk.f32.mxu1 %vm2231_vm1, %v2230_v34 }
 0x4ae   :  { %2078 = vmatprep.subr.mxu1 %v2230_v34  ;;  %v1121_v40 = vmul.f32 %v2199_v39, %v2185_v10  ;;  %v2201_v41 = vpop.eup %2200  ;;  %v1793_v39 = vld [vmem:[%s2656_s10 + $0x70] sm:$0xff]  ;;  %2115 = vmatprep.subr.mxu0 %v1794_v38 }
 0x4af   :  { %v1288_v43 = vmul.f32 %v2201_v41, %v2473_v8  ;;  %2116 = vmatpush3.msra.mxu0 %v1794_v38  ;;  %v1791_v41 = vld [vmem:[%s2656_s10 + $0x60] sm:$0xff] }
 0x4b0   :  { %2071 = vmatmul.mubr.msk.f32.vlgmr.msra.gmra.mxu1 %vm183_vm2, %v1121_v40  ;;  %v1792_v40 = vld [vmem:[%s2656_s10 + $0x68] sm:$0xff]  ;;  %2117 = vmatprep.subr.mxu0 %v1793_v39 }
 0x4b1   :  { %2079 = vmatpush3.msra.mxu1 %v1290_v42  ;;  %2080 = vmatprep.mubr.msk.f32.mxu1 %vm2231_vm1, %v2230_v34  ;;  %v1790_v42 = vld [vmem:[%s2656_s10 + $0x58] sm:$0xff] }
 0x4b2   :  { %2088 = vmatprep.subr.mxu1 %v2230_v34  ;;  %2118 = vmatpush3.msra.mxu0 %v1793_v39 }
 0x4b3   :  { %2119 = vmatprep.subr.mxu0 %v1792_v40 }
 0x4b4   :  { %2081 = vmatmul.mubr.msk.f32.vlgmr.msra.gmra.mxu1 %vm183_vm2, %v1288_v43  ;;  %2120 = vmatpush3.msra.mxu0 %v1792_v40  ;;  %v1789_v43 = vld [vmem:[%s2656_s10 + $0x50] sm:$0xff] }
 0x4b5   :  { %v2203_v45 = vpop.eup %2202  ;;  %2089 = vmatpush3.msra.mxu1 %v1457_v44  ;;  %2090 = vmatprep.mubr.msk.f32.mxu1 %vm2231_vm1, %v2230_v34  ;;  %v1549_v34 = vld [vmem:[%s2650_s4 + $0x10] sm:$0xff]  ;;  %v1788_v44 = vld [vmem:[%s2656_s10 + $0x48] sm:$0xff] }
 0x4b6   :  { %v1455_v46 = vmul.f32 %v2203_v45, %v2478_v12  ;;  %2093 = vmatprep.subr.mxu1 %v1550_v52  ;;  %2121 = vmatprep.subr.mxu0 %v1791_v41  ;;  %v1787_v45 = vld [vmem:[%s2656_s10 + $0x40] sm:$0xff] }
 0x4b7   :  { %2122 = vmatpush3.msra.mxu0 %v1791_v41 }
 0x4b8   :  { %2091 = vmatmul.mubr.msk.f32.vlgmr.msra.gmra.mxu1 %vm183_vm2, %v1455_v46  ;;  %2123 = vmatprep.subr.mxu0 %v1790_v42  ;;  %v1786_v46 = vld [vmem:[%s2656_s10 + $0x38] sm:$0xff] }
 0x4b9   :  { %2094 = vmatpush3.msra.mxu1 %v1550_v52  ;;  %2124 = vmatpush3.msra.mxu0 %v1790_v42 }
 0x4ba   :  { %2095 = vmatprep.subr.mxu1 %v1549_v34  ;;  %2125 = vmatprep.subr.mxu0 %v1789_v43 }
 0x4bb   :  { %2096 = vmatpush3.msra.mxu1 %v1549_v34  ;;  %2126 = vmatpush3.msra.mxu0 %v1789_v43 }
 0x4bc   :  { %2097 = vmatprep.subr.mxu1 %v1548_v55  ;;  %2127 = vmatprep.subr.mxu0 %v1788_v44 }
 0x4bd   :  { %2098 = vmatpush3.msra.mxu1 %v1548_v55  ;;  %2128 = vmatpush3.msra.mxu0 %v1788_v44 }
 0x4be   :  { %2099 = vmatprep.subr.mxu1 %v1547_v56  ;;  %2129 = vmatprep.subr.mxu0 %v1787_v45 }
 0x4bf   :  { %2100 = vmatpush3.msra.mxu1 %v1547_v56  ;;  %2130 = vmatpush3.msra.mxu0 %v1787_v45  ;;  %v1928_v56 = vld [vmem:[%s2652_s6] ss:$0 sm:$0xff] }
 0x4c0   :  { %2104 = vmatprep.subr.mxu1 %v1688_v31  ;;  %2131 = vmatprep.subr.mxu0 %v1786_v46 }
 0x4c1   :  { %2132 = vmatpush3.msra.mxu0 %v1786_v46 }
 0x52f   :  { %v343_v47 = vpop.f32.mrf.mxu1 }
 0x531   :  { %v2022_v48 = vpop.f32.mrf.mxu1 }
 0x532   :  { %v1784_v48 = vld [vmem:[%s2656_s10 + $0x28] sm:$0xff] }
 0x533   :  { %v510_v49 = vpop.f32.mrf.mxu1 }
 0x534   :  { %849 = vrot.lane.b32.xlu0 %v510_v49, %s2243_s25  ;;  %v1783_v49 = vld [vmem:[%s2656_s10 + $0x20] sm:$0xff] }
 0x535   :  { %v2032_v50 = vpop.f32.mrf.mxu1 }
 0x564   :  { %v677_v51 = vpop.f32.mrf.mxu1 }
 0x565   :  { %853 = vrot.lane.b32.xlu1 %v677_v51, %s2244_s30 }
 0x566   :  { %v2042_v53 = vpop.f32.mrf.mxu1 }
 0x568   :  { %v844_v54 = vpop.f32.mrf.mxu1 }
 0x569   :  { %857 = vrot.lane.b32.xlu1 %v844_v54, %s2245_s17 }
 0x56a   :  { %v2052_v57 = vpop.f32.mrf.mxu1 }
 0x56c   :  { %v1027_v58 = vpop.f32.mrf.mxu1 }
 0x56e   :  { %v2062_v59 = vpop.f32.mrf.mxu1 }
 0x570   :  { %v1194_v60 = vpop.f32.mrf.mxu1 }
 0x571   :  { %1533 = vrot.lane.b32.xlu0 %v1194_v60, %s2243_s25 }
 0x572   :  { %v2072_v61 = vpop.f32.mrf.mxu1 }
 0x574   :  { %v1361_v62 = vpop.f32.mrf.mxu1 }
 0x575   :  { %1537 = vrot.lane.b32.xlu0 %v1361_v62, %s2244_s30 }
 0x576   :  { %v2082_v63 = vpop.f32.mrf.mxu1 }
 0x578   :  { %v1528_v2 = vpop.f32.mrf.mxu1 }
 0x579   :  { %1541 = vrot.lane.b32.xlu1 %v1528_v2, %s2245_s17 }
 0x57a   :  { %v2092_v36 = vpop.f32.mrf.mxu1 }
 0x57b   :  { %v1782_v36 = vld [vmem:[%s2656_s10 + $0x18] sm:$0xff] }
 0x5a6   :  { %v850_v3 = vpop.permute.xlu0 %849 }
 0x5a7   :  { %v860_v5 = vsel %vm183_vm2, %v343_v47, %v850_v3  ;;  %v1785_v47 = vld [vmem:[%s2656_s10 + $0x30] sm:$0xff] }
 0x5a8   :  { %2133 = vmatprep.subr.mxu0 %v1785_v47  ;;  %v1781_v3 = vld [vmem:[%s2656_s10 + $0x10] sm:$0xff] }
 0x5a9   :  { %2134 = vmatpush3.msra.mxu0 %v1785_v47 }
 0x5aa   :  { %2135 = vmatprep.subr.mxu0 %v1784_v48 }
 0x5ab   :  { %2136 = vmatpush3.msra.mxu0 %v1784_v48 }
 0x5ac   :  { %2137 = vmatprep.subr.mxu0 %v1783_v49 }
 0x5ad   :  { %2138 = vmatpush3.msra.mxu0 %v1783_v49 }
 0x5ae   :  { %2139 = vmatprep.subr.mxu0 %v1782_v36 }
 0x5af   :  { %2140 = vmatpush3.msra.mxu0 %v1782_v36 }
 0x5b0   :  { %2141 = vmatprep.subr.mxu0 %v1781_v3 }
 0x5b1   :  { %2142 = vmatpush3.msra.mxu0 %v1781_v3 }
 0x5d7   :  { %v854_v4 = vpop.permute.xlu1 %853 }
 0x5d8   :  { %v862_v6 = vsel %vm861_vm4, %v860_v5, %v854_v4  ;;  %v1780_v4 = vld [vmem:[%s2656_s10 + $0x8] sm:$0xff]  ;;  %v1779_v5 = vld [vmem:[%s2656_s10] sm:$0xff]  ;;  %s2246_s10 = smov [#allocation2]  }
 0x5d9   :  { %2143 = vmatprep.subr.mxu0 %v1780_v4  ;;  %s1886_s4 = sshll.u32 %s2246_s10, 4  ;;  %s1887_s4 = int_to_ptr.vmem [resolvable:$true] %s1886_s4 }
 0x5da   :  { %2144 = vmatpush3.msra.mxu0 %v1780_v4  ;;  %p2213_p1 = scmp.lt.s32.totalorder %s1887_s4, %s1887_s4 }
 0x5db   :  { %v858_v7 = vpop.permute.xlu1 %857  ;;  %2145 = vmatprep.subr.mxu0 %v1779_v5 }
 0x5dc   :  { %v864_v8 = vsel %vm863_vm5, %v862_v6, %v858_v7  ;;  %2146 = vmatpush3.msra.mxu0 %v1779_v5  ;;  %v1930_v6 = vld [vmem:[%s2655_s9] ss:$0 sm:$0xff]  ;;  %s2208_s9 = scalar_lea.vmem %s1887_s4, 256 }
 0x5dd   :  { %2101 = vmatprep.mubr.msk.f32.mxu1 %vm46_vm0, %v864_v8  ;;  %p2209_p0 = scmp.ne.s32.totalorder %s1887_s4, %s2208_s9  ;;  %p2214_p2 = scmp.lt.s32.totalorder %s2208_s9, %s2208_s9 }
 0x5df   :  { %p2215_p3 = por %p2214_p2, %p2213_p1 }
 0x5e1   :  { %p2216_p4 = pnand %p2215_p3, %p2209_p0 }
 0x5e3   :  { %v1534_v9 = vpop.permute.xlu0 %1533 }
 0x5e4   :  { %v1544_v11 = vsel %vm183_vm2, %v1027_v58, %v1534_v9  ;;  %v1929_v58 = vld [vmem:[%s2653_s7] ss:$0 sm:$0xff] }
 0x5e7   :  { %v1538_v10 = vpop.permute.xlu0 %1537 }
 0x5e8   :  { %v1545_v12 = vsel %vm861_vm4, %v1544_v11, %v1538_v10 }
 0x5eb   :  { %v1542_v13 = vpop.permute.xlu1 %1541 }
 0x5ec   :  { %v1546_v14 = vsel %vm863_vm5, %v1545_v12, %v1542_v13  ;;  %v1933_v13 = vld [vmem:[%s2657_s11] ss:$0 sm:$0xff] }
 0x5ed   :  { %2102 = vmatmul.mubr.msk.f32.vlgmr.msra.gmra.mxu1 %vm46_vm0, %v1546_v14 }
 0x5ee   :  { %2105 = vmatpush3.msra.mxu1 %v1688_v31 }
 0x5ef   :  { %2106 = vmatprep.subr.mxu1 %v1687_v32 }
 0x5f0   :  { %2107 = vmatpush3.msra.mxu1 %v1687_v32 }
 0x5f1   :  { %2108 = vmatprep.subr.mxu1 %v1686_v33 }
 0x5f2   :  { %2109 = vmatpush3.msra.mxu1 %v1686_v33 }
 0x5f3   :  { %2110 = vmatprep.subr.mxu1 %v1685_v37 }
 0x5f4   :  { %2111 = vmatpush3.msra.mxu1 %v1685_v37 }
 0x6ad   :  { %v2103_v16 = vpop.f32.mrf.mxu1 }
 0x6ae   :  { %v1636_v17 = vadd.f32 %v2103_v16, %v1925_v15 }
 0x6af   :  { %v1630_v18 = vpop.f32.mrf.mxu1 }
 0x6b0   :  { %v2541_v19 = vadd.f32 %v1636_v17, %v2321_v1  ;;  %v1631_v20 = vadd.f32 %v1925_v15, %v1630_v18 }
 0x6b2   :  { %v2544_v21 = vadd.f32 %v1631_v20, %v2316_v0  ;;  %v1646_v22 = vsel %vm46_vm0, %v2541_v19, 0.0 }
 0x6b3   :  { %1647 = vadd.xlane.f32.xlu1 %v1646_v22 }
 0x6b4   :  { %v1643_v35 = vsel %vm46_vm0, %v2544_v21, 0.0 }
 0x6b5   :  { %1644 = vadd.xlane.f32.xlu0 %v1643_v35 }
 0x73c   :  { %v1648_v23 = vpop.xlane.xlu1 %1647 }
 0x73d   :  { %v1650_v24 = vmul.f32 0.03125, %v1648_v23 }
 0x73e   :  { %v1645_v25 = vpop.xlane.xlu0 %1644 }
 0x73f   :  { %v1649_v26 = vmul.f32 0.03125, %v1645_v25  ;;  %v2551_v27 = vsub.f32 %v2541_v19, %v1650_v24 }
 0x741   :  { %v2554_v1 = vsub.f32 %v2544_v21, %v1649_v26  ;;  %v1654_v29 = vmul.f32 %v2551_v27, %v2551_v27 }
 0x743   :  { %v1653_v0 = vmul.f32 %v2554_v1, %v2554_v1  ;;  %v1658_v30 = vsel %vm46_vm0, %v1654_v29, 0.0 }
 0x745   :  { %v1655_v28 = vsel %vm46_vm0, %v1653_v0, 0.0 }
 0x746   :  { %1656 = vadd.xlane.f32.xlu0 %v1655_v28 }
 0x74a   :  { %1659 = vadd.xlane.f32.xlu0 %v1658_v30 }
 0x7cf   :  { %v1657_v50 = vpop.xlane.xlu0 %1656 }
 0x7d0   :  { %v1661_v51 = vmul.f32 0.03125, %v1657_v50 }
 0x7d2   :  { %v1663_v52 = vadd.f32 1e-05, %v1661_v51 }
 0x7d3   :  { %v1660_v34 = vpop.xlane.xlu0 %1659 }
 0x7d4   :  { %2204 = vrsqrt.f32 %v1663_v52  ;;  %v1662_v53 = vmul.f32 0.03125, %v1660_v34 }
 0x7d6   :  { %v1664_v54 = vadd.f32 1e-05, %v1662_v53 }
 0x7d8   :  { %2206 = vrsqrt.f32 %v1664_v54 }
 0x7e1   :  { %v2205_v55 = vpop.eup %2204 }
 0x7e2   :  { %v1667_v57 = vmul.f32 %v2205_v55, %v2554_v1 }
 0x7e4   :  { %v1675_v59 = vmul.f32 %v1928_v56, %v1667_v57 }
 0x7e5   :  { %v2207_v60 = vpop.eup %2206 }
 0x7e6   :  { %v1668_v61 = vmul.f32 %v2207_v60, %v2551_v27  ;;  %v1683_v62 = vadd.f32 %v1929_v58, %v1675_v59 }
 0x7e8   :  { %v1676_v63 = vmul.f32 %v1928_v56, %v1668_v61  ;;  %2112 = vmatprep.mubr.msk.f32.mxu1 %vm46_vm0, %v1683_v62 }
 0x7ea   :  { %v1684_v2 = vadd.f32 %v1929_v58, %v1676_v63 }
 0x7ec   :  { %2113 = vmatmul.mubr.msk.f32.vlgmr.msra.gmra.mxu1 %vm46_vm0, %v1684_v2 }
 0x8ac   :  { %v2114_v7 = vpop.f32.mrf.mxu1 }
 0x8ad   :  { %v1774_v8 = vadd.f32 %v2114_v7, %v1930_v6 }
 0x8ae   :  { %v1768_v9 = vpop.f32.mrf.mxu1 }
 0x8af   :  { %v1769_v10 = vadd.f32 %v1930_v6, %v1768_v9  ;;  %v1778_v12 = vmax.f32 %v1774_v8, 0.0 }
 0x8b1   :  { %v1777_v11 = vmax.f32 %v1769_v10, 0.0 }
 0x8b3   :  { %2147 = vmatprep.mubr.f32.mxu0 %v1777_v11 }
 0x8b4   :  { %2148 = vmatmul.mubr.f32.vlgmr.msra.gmra.mxu0 %v1778_v12 }
 0x974   :  { %v2149_v14 = vpop.f32.mrf.mxu0 }
 0x975   :  { %v1874_v15 = vadd.f32 %v2149_v14, %v1933_v13 }
 0x976   :  { %v1868_v16 = vpop.f32.mrf.mxu0 }
 0x977   :  { %v1878_v17 = vadd.f32 %v1874_v15, %v2541_v19  ;;  %v1869_v18 = vadd.f32 %v1933_v13, %v1868_v16 }
 0x979   :  { %1880 = vst.msk [vmem:[#allocation2 + $0x8] sm:$0xff] %vm46_vm0, %v1878_v17  ;;  %v1877_v20 = vadd.f32 %v1869_v18, %v2544_v21 }
 0x97b   :  { %1879 = vst.msk [vmem:[#allocation2] sm:$0xff] %vm46_vm0, %v1877_v20 }
 0x97c   :  { %2219 = shalt.err (!%p2216_p4)
}
 0x97d   :  { %s2247_s11 = smov 128  }
 0x97e   :  { %1892 = dma.vmem_to_hbm [thread:$0]  %s1887_s4, 256, %s2658_s12, [#allocation3], %s2247_s11, %s2247_s11, %s2243_s25  }
 0x97f   :  { %2228 = dma.done.wait [#allocation3], 256  }
 0x980   :  { %2229 = vsyncadd [#allocation3], 4294967040 }
 0x981   :  { %1896 = vsyncpa [#allocation3], 1 }

</bundles_post_ra>
